<compile_context>
chip_gen: v7x
topology: tpu7x:2x2x1
jax: 0.10.0
libtpu: 0.0.40
codegen_flags: <defaults>
</compile_context>

<pallas_src>
import functools

import jax
import jax.numpy as jnp
from jax import lax
from jax.experimental import pallas as pl
from jax.experimental.pallas import tpu as pltpu

BN_EPS = 1e-5
LANES = 128


def _round_up(a, b):
    return (a + b - 1) // b * b


# ------------------------- Pass 1: BN statistics ----------------------------

def bn_stats_kernel(x_ref, sum_ref, sq_ref):
    """Grid-accumulated per-channel sum / sum-of-squares over tiled rows."""
    @pl.when(pl.program_id(0) == 0)
    def _init():
        sum_ref[...] = jnp.zeros_like(sum_ref)
        sq_ref[...] = jnp.zeros_like(sq_ref)

    x = x_ref[...]                                        # (TILE_M, Cin) f32
    sum_ref[...] += jnp.sum(x, axis=0, keepdims=True)
    sq_ref[...] += jnp.sum(x * x, axis=0, keepdims=True)


# --------------- Pass 2: fused BN-apply + ReLU + 3x3x3 conv ------------------

def conv_tap_kernel(x_ref, w_ref, scale_ref, shift_ref, bias_ref, o_ref,
                    *, k, w_stride, mrow):
    """One (n, d_out, kd) grid step: BN+ReLU one depth plane, accumulate k*k taps."""
    kd = pl.program_id(2)

    # Fused BatchNorm affine + ReLU (f32 math) on the flattened (H*W, Cin) plane.
    x = x_ref[0, 0]                                       # (HWP, Cin) f32
    y = jnp.maximum(x * scale_ref[...] + shift_ref[...], 0.0)

    # k*k in-plane taps: 2-D MXU matmuls, bf16 operands, f32 accumulation.
    acc = jnp.zeros((mrow, o_ref.shape[-1]), jnp.float32)
    for kh in range(k):
        for kw in range(k):
            off = kh * w_stride + kw                      # static offset
            win = y[off:off + mrow, :].astype(jnp.bfloat16)
            w_tap = w_ref[kd * (k * k) + kh * k + kw]     # (Cin, COUT_PAD) bf16
            acc = acc + jnp.dot(win, w_tap, preferred_element_type=jnp.float32)

    @pl.when(kd == 0)
    def _first():
        o_ref[0, 0] = acc

    @pl.when(kd != 0)
    def _accum():
        o_ref[0, 0] += acc

    @pl.when(kd == k - 1)
    def _finalize():
        o_ref[0, 0] += bias_ref[...]                      # broadcast (1, COUT_PAD)


# ------------------------------- wrapper -------------------------------------

@functools.partial(jax.jit, static_argnames=("kernel_size",))
def conv3d_block_forward(x_ncdhw, gamma, beta, weight, bias, *, kernel_size=3):
    """BN (training-mode batch stats) -> ReLU -> Conv3d (valid, stride 1, bias)."""
    N, Cin, D, H, W = x_ncdhw.shape
    Cout = weight.shape[0]
    k = kernel_size
    Do, Ho, Wo = D - k + 1, H - k + 1, W - k + 1

    x_cl = jnp.transpose(x_ncdhw, (0, 2, 3, 4, 1)).astype(jnp.float32)  # (N,D,H,W,Cin)

    # ---------------- Pass 1: exact BN statistics (tiled grid reduction) -----
    M = N * D * H * W
    x_flat = x_cl.reshape(M, Cin)
    TILE_M = min(1024, _round_up(M, 8))
    Mpad = _round_up(M, TILE_M)
    if Mpad != M:
        x_flat = jnp.pad(x_flat, ((0, Mpad - M), (0, 0)))  # zero rows: sums unaffected

    ch_sum, ch_sq = pl.pallas_call(
        bn_stats_kernel,
        grid=(Mpad // TILE_M,),
        in_specs=[pl.BlockSpec((TILE_M, Cin), lambda i: (i, 0))],
        out_specs=(pl.BlockSpec((1, Cin), lambda i: (0, 0)),
                   pl.BlockSpec((1, Cin), lambda i: (0, 0))),
        out_shape=(jax.ShapeDtypeStruct((1, Cin), jnp.float32),
                   jax.ShapeDtypeStruct((1, Cin), jnp.float32)),
        compiler_params=pltpu.CompilerParams(dimension_semantics=("arbitrary",)),
    )(x_flat)

    mean = ch_sum / M
    var = jnp.maximum(ch_sq / M - mean * mean, 0.0)       # biased var (PyTorch train BN)
    scale = (gamma.reshape(1, Cin) * lax.rsqrt(var + BN_EPS)).astype(jnp.float32)
    shift = (beta.reshape(1, Cin) - mean * scale).astype(jnp.float32)

    # ---------------- Pass 2: fused BN + ReLU + conv --------------------------
    MROW = _round_up(Ho * W, 8)                 # flat output rows per depth plane
    HWP = _round_up((k - 1) * W + (k - 1) + MROW, 8)       # padded input rows
    COUT_PAD = _round_up(Cout, LANES)                      # lane-dense output

    x4 = x_cl.reshape(N, D, H * W, Cin)
    x4 = jnp.pad(x4, ((0, 0), (0, 0), (0, HWP - H * W), (0, 0)))

    # weight (Cout, Cin, kd, kh, kw) -> (k^3, Cin, COUT_PAD) bf16, resident in VMEM
    w_taps = jnp.transpose(weight, (2, 3, 4, 1, 0)).reshape(k * k * k, Cin, Cout)
    w_taps = jnp.pad(w_taps, ((0, 0), (0, 0), (0, COUT_PAD - Cout))).astype(jnp.bfloat16)
    bias_p = jnp.pad(bias, (0, COUT_PAD - Cout)).reshape(1, COUT_PAD).astype(jnp.float32)

    flops = 2 * N * Do * (k ** 3) * MROW * Cin * COUT_PAD
    bytes_accessed = (k * x4.size * 4 + w_taps.size * 2 + N * Do * MROW * COUT_PAD * 4)

    out_p = pl.pallas_call(
        functools.partial(conv_tap_kernel, k=k, w_stride=W, mrow=MROW),
        grid=(N, Do, k),
        in_specs=[
            pl.BlockSpec((1, 1, HWP, Cin), lambda n, d, kd: (n, d + kd, 0, 0)),
            pl.BlockSpec((k * k * k, Cin, COUT_PAD), lambda n, d, kd: (0, 0, 0)),
            pl.BlockSpec((1, Cin), lambda n, d, kd: (0, 0)),
            pl.BlockSpec((1, Cin), lambda n, d, kd: (0, 0)),
            pl.BlockSpec((1, COUT_PAD), lambda n, d, kd: (0, 0)),
        ],
        out_specs=pl.BlockSpec((1, 1, MROW, COUT_PAD), lambda n, d, kd: (n, d, 0, 0)),
        out_shape=jax.ShapeDtypeStruct((N, Do, MROW, COUT_PAD), jnp.float32),
        compiler_params=pltpu.CompilerParams(
            dimension_semantics=("parallel", "parallel", "arbitrary")),
        cost_estimate=pl.CostEstimate(flops=flops, transcendentals=0,
                                      bytes_accessed=bytes_accessed),
    )(x4, w_taps, scale, shift, bias_p)

    # Unpack: rows are flat p = ho*W + w; keep w < Wo and channels < Cout.
    out = out_p[:, :, :Ho * W, :Cout].reshape(N, Do, Ho, W, Cout)[:, :, :, :Wo, :]
    return jnp.transpose(out, (0, 4, 1, 2, 3))             # back to NCDHW


# ----------------------------- reference (pure JAX) --------------------------

def reference_forward(x, gamma, beta, weight, bias):
    mean = jnp.mean(x, axis=(0, 2, 3, 4), keepdims=True)
    var = jnp.mean((x - mean) ** 2, axis=(0, 2, 3, 4), keepdims=True)
    g = gamma.reshape(1, -1, 1, 1, 1)
    b = beta.reshape(1, -1, 1, 1, 1)
    y = (x - mean) * lax.rsqrt(var + BN_EPS) * g + b
    y = jnp.maximum(y, 0.0)
    out = lax.conv_general_dilated(
        y, weight, window_strides=(1, 1, 1), padding="VALID",
        dimension_numbers=("NCDHW", "OIDHW", "NCDHW"))
    return out + bias.reshape(1, -1, 1, 1, 1)


# ----------------------------------- main ------------------------------------

if __name__ == "__main__":
    key = jax.random.PRNGKey(0)
    k_x, k_w, k_b, k_g, k_bb = jax.random.split(key, 5)

    N, Cin, D, H, W = 2, 8, 8, 8, 8
    Cout, ksz = 8, 3

    x = jax.random.normal(k_x, (N, Cin, D, H, W), dtype=jnp.float32)

    # BatchNorm3d affine params (perturbed around the default 1/0 init).
    gamma = 1.0 + 0.1 * jax.random.normal(k_g, (Cin,), dtype=jnp.float32)
    beta = 0.05 * jax.random.normal(k_bb, (Cin,), dtype=jnp.float32)

    # Conv3d kaiming_normal_(a=0, mode='fan_in')-style init, deterministic.
    fan_in = Cin * ksz * ksz * ksz
    w_std = (2.0 / fan_in) ** 0.5
    weight = w_std * jax.random.normal(k_w, (Cout, Cin, ksz, ksz, ksz), dtype=jnp.float32)
    bound = 1.0 / (fan_in ** 0.5)
    bias = jax.random.uniform(k_b, (Cout,), minval=-bound, maxval=bound, dtype=jnp.float32)

    out = conv3d_block_forward(x, gamma, beta, weight, bias, kernel_size=ksz)
    out = jax.block_until_ready(out)

    ref = reference_forward(x, gamma, beta, weight, bias)
    assert out.shape == (N, Cout, D - ksz + 1, H - ksz + 1, W - ksz + 1), out.shape
    max_err = float(jnp.max(jnp.abs(out - ref)))
    # bf16 MXU operands (f32 accumulate) -> modest tolerance vs the f32 reference.
    assert jnp.allclose(out, ref, atol=3e-2, rtol=3e-2), max_err

    print("KERNEL_OK")
</pallas_src>

<mosaic_0001>
module attributes {stable_mosaic.version = 11 : i64} {
  func.func @bn_stats_kernel(%arg0: i32, %arg1: memref<1024x8xf32, #tpu.memory_space<vmem>>, %arg2: memref<1x8xf32, #tpu.memory_space<vmem>>, %arg3: memref<1x8xf32, #tpu.memory_space<vmem>>) attributes {dimension_semantics = [#tpu.dimension_semantics<arbitrary>], iteration_bounds = array<i64: 1>, scalar_prefetch = 0 : i64, scratch_operands = 0 : i64, tpu.core_type = #tpu.core_type<tc>, window_params = [{transform_indices = @transform_0, window_bounds = array<i64: 1024, 8>}, {pipeline_mode = #tpu.pipeline_mode<synchronous>, transform_indices = @transform_1, window_bounds = array<i64: 1, 8>}, {pipeline_mode = #tpu.pipeline_mode<synchronous>, transform_indices = @transform_2, window_bounds = array<i64: 1, 8>}]} {
    %c0_i32 = arith.constant 0 : i32
    %0 = arith.cmpi eq, %arg0, %c0_i32 : i32
    %1 = arith.extui %0 : i1 to i32
    %c0_i32_0 = arith.constant 0 : i32
    %2 = arith.cmpi ne, %1, %c0_i32_0 : i32
    scf.if %2 {
      %cst_11 = arith.constant 0.000000e+00 : f32
      %15 = vector.broadcast %cst_11 : f32 to vector<1x8xf32>
      %c0_12 = arith.constant 0 : index
      %c0_13 = arith.constant 0 : index
      %16 = vector.load %arg2[%c0_12, %c0_13] : memref<1x8xf32, #tpu.memory_space<vmem>>, vector<1x8xf32>
      tpu.vector_store %arg2[%c0_12, %c0_13], %15 {strides = array<i32>} : memref<1x8xf32, #tpu.memory_space<vmem>>, vector<1x8xf32>,
      %cst_14 = arith.constant 0.000000e+00 : f32
      %17 = vector.broadcast %cst_14 : f32 to vector<1x8xf32>
      %c0_15 = arith.constant 0 : index
      %c0_16 = arith.constant 0 : index
      %18 = vector.load %arg3[%c0_15, %c0_16] : memref<1x8xf32, #tpu.memory_space<vmem>>, vector<1x8xf32>
      tpu.vector_store %arg3[%c0_15, %c0_16], %17 {strides = array<i32>} : memref<1x8xf32, #tpu.memory_space<vmem>>, vector<1x8xf32>,
    } else {
    }
    %c0 = arith.constant 0 : index
    %c0_1 = arith.constant 0 : index
    %3 = vector.load %arg1[%c0, %c0_1] : memref<1024x8xf32, #tpu.memory_space<vmem>>, vector<1024x8xf32>
    %c0_2 = arith.constant 0 : index
    %c0_3 = arith.constant 0 : index
    %4 = vector.load %arg2[%c0_2, %c0_3] : memref<1x8xf32, #tpu.memory_space<vmem>>, vector<1x8xf32>
    %cst = arith.constant dense<0.000000e+00> : vector<8xf32>
    %5 = vector.multi_reduction <add>, %3, %cst [0] : vector<1024x8xf32> to vector<8xf32>
    %6 = vector.shape_cast %5 : vector<8xf32> to vector<1x8xf32>
    %7 = arith.addf %4, %6 : vector<1x8xf32>
    %c0_4 = arith.constant 0 : index
    %c0_5 = arith.constant 0 : index
    %8 = vector.load %arg2[%c0_4, %c0_5] : memref<1x8xf32, #tpu.memory_space<vmem>>, vector<1x8xf32>
    tpu.vector_store %arg2[%c0_4, %c0_5], %7 {strides = array<i32>} : memref<1x8xf32, #tpu.memory_space<vmem>>, vector<1x8xf32>,
    %c0_6 = arith.constant 0 : index
    %c0_7 = arith.constant 0 : index
    %9 = vector.load %arg3[%c0_6, %c0_7] : memref<1x8xf32, #tpu.memory_space<vmem>>, vector<1x8xf32>
    %10 = arith.mulf %3, %3 : vector<1024x8xf32>
    %cst_8 = arith.constant dense<0.000000e+00> : vector<8xf32>
    %11 = vector.multi_reduction <add>, %10, %cst_8 [0] : vector<1024x8xf32> to vector<8xf32>
    %12 = vector.shape_cast %11 : vector<8xf32> to vector<1x8xf32>
    %13 = arith.addf %9, %12 : vector<1x8xf32>
    %c0_9 = arith.constant 0 : index
    %c0_10 = arith.constant 0 : index
    %14 = vector.load %arg3[%c0_9, %c0_10] : memref<1x8xf32, #tpu.memory_space<vmem>>, vector<1x8xf32>
    tpu.vector_store %arg3[%c0_9, %c0_10], %13 {strides = array<i32>} : memref<1x8xf32, #tpu.memory_space<vmem>>, vector<1x8xf32>,
    return
  }
  func.func @transform_0(%arg0: i32) -> (i32, i32) {
    %c0_i32 = arith.constant 0 : i32
    %c0_i32_0 = arith.constant 0 : i32
    return %arg0, %c0_i32 : i32, i32
  }
  func.func @transform_1(%arg0: i32) -> (i32, i32) {
    %c0_i32 = arith.constant 0 : i32
    %c0_i32_0 = arith.constant 0 : i32
    %c0_i32_1 = arith.constant 0 : i32
    return %c0_i32, %c0_i32_0 : i32, i32
  }
  func.func @transform_2(%arg0: i32) -> (i32, i32) {
    %c0_i32 = arith.constant 0 : i32
    %c0_i32_0 = arith.constant 0 : i32
    %c0_i32_1 = arith.constant 0 : i32
    return %c0_i32, %c0_i32_0 : i32, i32
  }
}

module attributes {stable_mosaic.version = 11 : i64} {
  func.func @conv_tap_kernel(%arg0: i32, %arg1: i32, %arg2: i32, %arg3: memref<1x1x72x8xf32, #tpu.memory_space<vmem>>, %arg4: memref<27x8x128xbf16, #tpu.memory_space<vmem>>, %arg5: memref<1x8xf32, #tpu.memory_space<vmem>>, %arg6: memref<1x8xf32, #tpu.memory_space<vmem>>, %arg7: memref<1x128xf32, #tpu.memory_space<vmem>>, %arg8: memref<1x1x48x128xf32, #tpu.memory_space<vmem>>) attributes {dimension_semantics = [#tpu.dimension_semantics<parallel>, #tpu.dimension_semantics<parallel>, #tpu.dimension_semantics<arbitrary>], iteration_bounds = array<i64: 2, 6, 3>, scalar_prefetch = 0 : i64, scratch_operands = 0 : i64, tpu.core_type = #tpu.core_type<tc>, window_params = [{transform_indices = @transform_0, window_bounds = array<i64: 1, 1, 72, 8>}, {pipeline_mode = #tpu.pipeline_mode<synchronous>, transform_indices = @transform_1, window_bounds = array<i64: 27, 8, 128>}, {pipeline_mode = #tpu.pipeline_mode<synchronous>, transform_indices = @transform_2, window_bounds = array<i64: 1, 8>}, {pipeline_mode = #tpu.pipeline_mode<synchronous>, transform_indices = @transform_3, window_bounds = array<i64: 1, 8>}, {pipeline_mode = #tpu.pipeline_mode<synchronous>, transform_indices = @transform_4, window_bounds = array<i64: 1, 128>}, {transform_indices = @transform_5, window_bounds = array<i64: 1, 1, 48, 128>}]} {
    %c0 = arith.constant 0 : index
    %c0_0 = arith.constant 0 : index
    %c0_1 = arith.constant 0 : index
    %c0_2 = arith.constant 0 : index
    %0 = vector.load %arg3[%c0, %c0_0, %c0_1, %c0_2] : memref<1x1x72x8xf32, #tpu.memory_space<vmem>>, vector<1x1x72x8xf32>
    %1 = vector.shape_cast %0 : vector<1x1x72x8xf32> to vector<72x8xf32>
    %c0_3 = arith.constant 0 : index
    %c0_4 = arith.constant 0 : index
    %2 = vector.load %arg5[%c0_3, %c0_4] : memref<1x8xf32, #tpu.memory_space<vmem>>, vector<1x8xf32>
    %3 = vector.broadcast %2 : vector<1x8xf32> to vector<72x8xf32>
    %4 = arith.mulf %1, %3 : vector<72x8xf32>
    %c0_5 = arith.constant 0 : index
    %c0_6 = arith.constant 0 : index
    %5 = vector.load %arg6[%c0_5, %c0_6] : memref<1x8xf32, #tpu.memory_space<vmem>>, vector<1x8xf32>
    %6 = vector.broadcast %5 : vector<1x8xf32> to vector<72x8xf32>
    %7 = arith.addf %4, %6 : vector<72x8xf32>
    %cst = arith.constant 0.000000e+00 : f32
    %8 = vector.broadcast %cst : f32 to vector<72x8xf32>
    %9 = arith.maximumf %7, %8 : vector<72x8xf32>
    %cst_7 = arith.constant 0.000000e+00 : f32
    %10 = vector.broadcast %cst_7 : f32 to vector<48x128xf32>
    %11 = vector.extract_strided_slice %9 {offsets = [0, 0], sizes = [48, 8], strides = [1, 1]} : vector<72x8xf32> to vector<48x8xf32>
    %12 = arith.truncf %11 : vector<48x8xf32> to vector<48x8xbf16>
    %c9_i32 = arith.constant 9 : i32
    %13 = arith.muli %arg2, %c9_i32 : i32
    %c0_i32 = arith.constant 0 : i32
    %14 = arith.addi %13, %c0_i32 : i32
    %c0_i32_8 = arith.constant 0 : i32
    %15 = arith.addi %14, %c0_i32_8 : i32
    %16 = arith.index_cast %15 : i32 to index
    %c0_9 = arith.constant 0 : index
    %c0_10 = arith.constant 0 : index
    %17 = vector.load %arg4[%16, %c0_9, %c0_10] : memref<27x8x128xbf16, #tpu.memory_space<vmem>>, vector<1x8x128xbf16>
    %18 = vector.shape_cast %17 : vector<1x8x128xbf16> to vector<8x128xbf16>
    %cst_11 = arith.constant dense<0.000000e+00> : vector<48x128xf32>
    %19 = tpu.matmul %12, %18, %cst_11 {dimension_numbers = #tpu.dot_dimension_numbers<[1], [0], [0], [1], [0, 0, 1, 1], [], []>} : vector<48x8xbf16>, vector<8x128xbf16>, vector<48x128xf32> -> vector<48x128xf32>
    %20 = arith.addf %10, %19 : vector<48x128xf32>
    %21 = vector.extract_strided_slice %9 {offsets = [1, 0], sizes = [48, 8], strides = [1, 1]} : vector<72x8xf32> to vector<48x8xf32>
    %22 = arith.truncf %21 : vector<48x8xf32> to vector<48x8xbf16>
    %c9_i32_12 = arith.constant 9 : i32
    %23 = arith.muli %arg2, %c9_i32_12 : i32
    %c0_i32_13 = arith.constant 0 : i32
    %24 = arith.addi %23, %c0_i32_13 : i32
    %c1_i32 = arith.constant 1 : i32
    %25 = arith.addi %24, %c1_i32 : i32
    %26 = arith.index_cast %25 : i32 to index
    %c0_14 = arith.constant 0 : index
    %c0_15 = arith.constant 0 : index
    %27 = vector.load %arg4[%26, %c0_14, %c0_15] : memref<27x8x128xbf16, #tpu.memory_space<vmem>>, vector<1x8x128xbf16>
    %28 = vector.shape_cast %27 : vector<1x8x128xbf16> to vector<8x128xbf16>
    %cst_16 = arith.constant dense<0.000000e+00> : vector<48x128xf32>
    %29 = tpu.matmul %22, %28, %cst_16 {dimension_numbers = #tpu.dot_dimension_numbers<[1], [0], [0], [1], [0, 0, 1, 1], [], []>} : vector<48x8xbf16>, vector<8x128xbf16>, vector<48x128xf32> -> vector<48x128xf32>
    %30 = arith.addf %20, %29 : vector<48x128xf32>
    %31 = vector.extract_strided_slice %9 {offsets = [2, 0], sizes = [48, 8], strides = [1, 1]} : vector<72x8xf32> to vector<48x8xf32>
    %32 = arith.truncf %31 : vector<48x8xf32> to vector<48x8xbf16>
    %c9_i32_17 = arith.constant 9 : i32
    %33 = arith.muli %arg2, %c9_i32_17 : i32
    %c0_i32_18 = arith.constant 0 : i32
    %34 = arith.addi %33, %c0_i32_18 : i32
    %c2_i32 = arith.constant 2 : i32
    %35 = arith.addi %34, %c2_i32 : i32
    %36 = arith.index_cast %35 : i32 to index
    %c0_19 = arith.constant 0 : index
    %c0_20 = arith.constant 0 : index
    %37 = vector.load %arg4[%36, %c0_19, %c0_20] : memref<27x8x128xbf16, #tpu.memory_space<vmem>>, vector<1x8x128xbf16>
    %38 = vector.shape_cast %37 : vector<1x8x128xbf16> to vector<8x128xbf16>
    %cst_21 = arith.constant dense<0.000000e+00> : vector<48x128xf32>
    %39 = tpu.matmul %32, %38, %cst_21 {dimension_numbers = #tpu.dot_dimension_numbers<[1], [0], [0], [1], [0, 0, 1, 1], [], []>} : vector<48x8xbf16>, vector<8x128xbf16>, vector<48x128xf32> -> vector<48x128xf32>
    %40 = arith.addf %30, %39 : vector<48x128xf32>
    %41 = vector.extract_strided_slice %9 {offsets = [8, 0], sizes = [48, 8], strides = [1, 1]} : vector<72x8xf32> to vector<48x8xf32>
    %42 = arith.truncf %41 : vector<48x8xf32> to vector<48x8xbf16>
    %c9_i32_22 = arith.constant 9 : i32
    %43 = arith.muli %arg2, %c9_i32_22 : i32
    %c3_i32 = arith.constant 3 : i32
    %44 = arith.addi %43, %c3_i32 : i32
    %c0_i32_23 = arith.constant 0 : i32
    %45 = arith.addi %44, %c0_i32_23 : i32
    %46 = arith.index_cast %45 : i32 to index
    %c0_24 = arith.constant 0 : index
    %c0_25 = arith.constant 0 : index
    %47 = vector.load %arg4[%46, %c0_24, %c0_25] : memref<27x8x128xbf16, #tpu.memory_space<vmem>>, vector<1x8x128xbf16>
    %48 = vector.shape_cast %47 : vector<1x8x128xbf16> to vector<8x128xbf16>
    %cst_26 = arith.constant dense<0.000000e+00> : vector<48x128xf32>
    %49 = tpu.matmul %42, %48, %cst_26 {dimension_numbers = #tpu.dot_dimension_numbers<[1], [0], [0], [1], [0, 0, 1, 1], [], []>} : vector<48x8xbf16>, vector<8x128xbf16>, vector<48x128xf32> -> vector<48x128xf32>
    %50 = arith.addf %40, %49 : vector<48x128xf32>
    %51 = vector.extract_strided_slice %9 {offsets = [9, 0], sizes = [48, 8], strides = [1, 1]} : vector<72x8xf32> to vector<48x8xf32>
    %52 = arith.truncf %51 : vector<48x8xf32> to vector<48x8xbf16>
    %c9_i32_27 = arith.constant 9 : i32
    %53 = arith.muli %arg2, %c9_i32_27 : i32
    %c3_i32_28 = arith.constant 3 : i32
    %54 = arith.addi %53, %c3_i32_28 : i32
    %c1_i32_29 = arith.constant 1 : i32
    %55 = arith.addi %54, %c1_i32_29 : i32
    %56 = arith.index_cast %55 : i32 to index
    %c0_30 = arith.constant 0 : index
    %c0_31 = arith.constant 0 : index
    %57 = vector.load %arg4[%56, %c0_30, %c0_31] : memref<27x8x128xbf16, #tpu.memory_space<vmem>>, vector<1x8x128xbf16>
    %58 = vector.shape_cast %57 : vector<1x8x128xbf16> to vector<8x128xbf16>
    %cst_32 = arith.constant dense<0.000000e+00> : vector<48x128xf32>
    %59 = tpu.matmul %52, %58, %cst_32 {dimension_numbers = #tpu.dot_dimension_numbers<[1], [0], [0], [1], [0, 0, 1, 1], [], []>} : vector<48x8xbf16>, vector<8x128xbf16>, vector<48x128xf32> -> vector<48x128xf32>
    %60 = arith.addf %50, %59 : vector<48x128xf32>
    %61 = vector.extract_strided_slice %9 {offsets = [10, 0], sizes = [48, 8], strides = [1, 1]} : vector<72x8xf32> to vector<48x8xf32>
    %62 = arith.truncf %61 : vector<48x8xf32> to vector<48x8xbf16>
    %c9_i32_33 = arith.constant 9 : i32
    %63 = arith.muli %arg2, %c9_i32_33 : i32
    %c3_i32_34 = arith.constant 3 : i32
    %64 = arith.addi %63, %c3_i32_34 : i32
    %c2_i32_35 = arith.constant 2 : i32
    %65 = arith.addi %64, %c2_i32_35 : i32
    %66 = arith.index_cast %65 : i32 to index
    %c0_36 = arith.constant 0 : index
    %c0_37 = arith.constant 0 : index
    %67 = vector.load %arg4[%66, %c0_36, %c0_37] : memref<27x8x128xbf16, #tpu.memory_space<vmem>>, vector<1x8x128xbf16>
    %68 = vector.shape_cast %67 : vector<1x8x128xbf16> to vector<8x128xbf16>
    %cst_38 = arith.constant dense<0.000000e+00> : vector<48x128xf32>
    %69 = tpu.matmul %62, %68, %cst_38 {dimension_numbers = #tpu.dot_dimension_numbers<[1], [0], [0], [1], [0, 0, 1, 1], [], []>} : vector<48x8xbf16>, vector<8x128xbf16>, vector<48x128xf32> -> vector<48x128xf32>
    %70 = arith.addf %60, %69 : vector<48x128xf32>
    %71 = vector.extract_strided_slice %9 {offsets = [16, 0], sizes = [48, 8], strides = [1, 1]} : vector<72x8xf32> to vector<48x8xf32>
    %72 = arith.truncf %71 : vector<48x8xf32> to vector<48x8xbf16>
    %c9_i32_39 = arith.constant 9 : i32
    %73 = arith.muli %arg2, %c9_i32_39 : i32
    %c6_i32 = arith.constant 6 : i32
    %74 = arith.addi %73, %c6_i32 : i32
    %c0_i32_40 = arith.constant 0 : i32
    %75 = arith.addi %74, %c0_i32_40 : i32
    %76 = arith.index_cast %75 : i32 to index
    %c0_41 = arith.constant 0 : index
    %c0_42 = arith.constant 0 : index
    %77 = vector.load %arg4[%76, %c0_41, %c0_42] : memref<27x8x128xbf16, #tpu.memory_space<vmem>>, vector<1x8x128xbf16>
    %78 = vector.shape_cast %77 : vector<1x8x128xbf16> to vector<8x128xbf16>
    %cst_43 = arith.constant dense<0.000000e+00> : vector<48x128xf32>
    %79 = tpu.matmul %72, %78, %cst_43 {dimension_numbers = #tpu.dot_dimension_numbers<[1], [0], [0], [1], [0, 0, 1, 1], [], []>} : vector<48x8xbf16>, vector<8x128xbf16>, vector<48x128xf32> -> vector<48x128xf32>
    %80 = arith.addf %70, %79 : vector<48x128xf32>
    %81 = vector.extract_strided_slice %9 {offsets = [17, 0], sizes = [48, 8], strides = [1, 1]} : vector<72x8xf32> to vector<48x8xf32>
    %82 = arith.truncf %81 : vector<48x8xf32> to vector<48x8xbf16>
    %c9_i32_44 = arith.constant 9 : i32
    %83 = arith.muli %arg2, %c9_i32_44 : i32
    %c6_i32_45 = arith.constant 6 : i32
    %84 = arith.addi %83, %c6_i32_45 : i32
    %c1_i32_46 = arith.constant 1 : i32
    %85 = arith.addi %84, %c1_i32_46 : i32
    %86 = arith.index_cast %85 : i32 to index
    %c0_47 = arith.constant 0 : index
    %c0_48 = arith.constant 0 : index
    %87 = vector.load %arg4[%86, %c0_47, %c0_48] : memref<27x8x128xbf16, #tpu.memory_space<vmem>>, vector<1x8x128xbf16>
    %88 = vector.shape_cast %87 : vector<1x8x128xbf16> to vector<8x128xbf16>
    %cst_49 = arith.constant dense<0.000000e+00> : vector<48x128xf32>
    %89 = tpu.matmul %82, %88, %cst_49 {dimension_numbers = #tpu.dot_dimension_numbers<[1], [0], [0], [1], [0, 0, 1, 1], [], []>} : vector<48x8xbf16>, vector<8x128xbf16>, vector<48x128xf32> -> vector<48x128xf32>
    %90 = arith.addf %80, %89 : vector<48x128xf32>
    %91 = vector.extract_strided_slice %9 {offsets = [18, 0], sizes = [48, 8], strides = [1, 1]} : vector<72x8xf32> to vector<48x8xf32>
    %92 = arith.truncf %91 : vector<48x8xf32> to vector<48x8xbf16>
    %c9_i32_50 = arith.constant 9 : i32
    %93 = arith.muli %arg2, %c9_i32_50 : i32
    %c6_i32_51 = arith.constant 6 : i32
    %94 = arith.addi %93, %c6_i32_51 : i32
    %c2_i32_52 = arith.constant 2 : i32
    %95 = arith.addi %94, %c2_i32_52 : i32
    %96 = arith.index_cast %95 : i32 to index
    %c0_53 = arith.constant 0 : index
    %c0_54 = arith.constant 0 : index
    %97 = vector.load %arg4[%96, %c0_53, %c0_54] : memref<27x8x128xbf16, #tpu.memory_space<vmem>>, vector<1x8x128xbf16>
    %98 = vector.shape_cast %97 : vector<1x8x128xbf16> to vector<8x128xbf16>
    %cst_55 = arith.constant dense<0.000000e+00> : vector<48x128xf32>
    %99 = tpu.matmul %92, %98, %cst_55 {dimension_numbers = #tpu.dot_dimension_numbers<[1], [0], [0], [1], [0, 0, 1, 1], [], []>} : vector<48x8xbf16>, vector<8x128xbf16>, vector<48x128xf32> -> vector<48x128xf32>
    %100 = arith.addf %90, %99 : vector<48x128xf32>
    %c0_i32_56 = arith.constant 0 : i32
    %101 = arith.cmpi eq, %arg2, %c0_i32_56 : i32
    %102 = arith.extui %101 : i1 to i32
    %c0_i32_57 = arith.constant 0 : i32
    %103 = arith.cmpi ne, %102, %c0_i32_57 : i32
    scf.if %103 {
      %c0_62 = arith.constant 0 : index
      %c0_63 = arith.constant 0 : index
      %c0_64 = arith.constant 0 : index
      %c0_65 = arith.constant 0 : index
      %110 = vector.load %arg8[%c0_62, %c0_63, %c0_64, %c0_65] : memref<1x1x48x128xf32, #tpu.memory_space<vmem>>, vector<1x1x48x128xf32>
      %111 = vector.shape_cast %110 : vector<1x1x48x128xf32> to vector<48x128xf32>
      %112 = vector.shape_cast %100 : vector<48x128xf32> to vector<1x1x48x128xf32>
      tpu.vector_store %arg8[%c0_62, %c0_63, %c0_64, %c0_65], %112 {strides = array<i32>} : memref<1x1x48x128xf32, #tpu.memory_space<vmem>>, vector<1x1x48x128xf32>,
    } else {
    }
    %c0_i32_58 = arith.constant 0 : i32
    %104 = arith.cmpi ne, %arg2, %c0_i32_58 : i32
    %105 = arith.extui %104 : i1 to i32
    %c0_i32_59 = arith.constant 0 : i32
    %106 = arith.cmpi ne, %105, %c0_i32_59 : i32
    scf.if %106 {
      %c0_62 = arith.constant 0 : index
      %c0_63 = arith.constant 0 : index
      %c0_64 = arith.constant 0 : index
      %c0_65 = arith.constant 0 : index
      %110 = vector.load %arg8[%c0_62, %c0_63, %c0_64, %c0_65] : memref<1x1x48x128xf32, #tpu.memory_space<vmem>>, vector<1x1x48x128xf32>
      %111 = vector.shape_cast %110 : vector<1x1x48x128xf32> to vector<48x128xf32>
      %112 = arith.addf %111, %100 : vector<48x128xf32>
      %c0_66 = arith.constant 0 : index
      %c0_67 = arith.constant 0 : index
      %c0_68 = arith.constant 0 : index
      %c0_69 = arith.constant 0 : index
      %113 = vector.load %arg8[%c0_66, %c0_67, %c0_68, %c0_69] : memref<1x1x48x128xf32, #tpu.memory_space<vmem>>, vector<1x1x48x128xf32>
      %114 = vector.shape_cast %113 : vector<1x1x48x128xf32> to vector<48x128xf32>
      %115 = vector.shape_cast %112 : vector<48x128xf32> to vector<1x1x48x128xf32>
      tpu.vector_store %arg8[%c0_66, %c0_67, %c0_68, %c0_69], %115 {strides = array<i32>} : memref<1x1x48x128xf32, #tpu.memory_space<vmem>>, vector<1x1x48x128xf32>,
    } else {
    }
    %c2_i32_60 = arith.constant 2 : i32
    %107 = arith.cmpi eq, %arg2, %c2_i32_60 : i32
    %108 = arith.extui %107 : i1 to i32
    %c0_i32_61 = arith.constant 0 : i32
    %109 = arith.cmpi ne, %108, %c0_i32_61 : i32
    scf.if %109 {
      %c0_62 = arith.constant 0 : index
      %c0_63 = arith.constant 0 : index
      %c0_64 = arith.constant 0 : index
      %c0_65 = arith.constant 0 : index
      %110 = vector.load %arg8[%c0_62, %c0_63, %c0_64, %c0_65] : memref<1x1x48x128xf32, #tpu.memory_space<vmem>>, vector<1x1x48x128xf32>
      %111 = vector.shape_cast %110 : vector<1x1x48x128xf32> to vector<48x128xf32>
      %c0_66 = arith.constant 0 : index
      %c0_67 = arith.constant 0 : index
      %112 = vector.load %arg7[%c0_66, %c0_67] : memref<1x128xf32, #tpu.memory_space<vmem>>, vector<1x128xf32>
      %113 = vector.broadcast %112 : vector<1x128xf32> to vector<48x128xf32>
      %114 = arith.addf %111, %113 : vector<48x128xf32>
      %c0_68 = arith.constant 0 : index
      %c0_69 = arith.constant 0 : index
      %c0_70 = arith.constant 0 : index
      %c0_71 = arith.constant 0 : index
      %115 = vector.load %arg8[%c0_68, %c0_69, %c0_70, %c0_71] : memref<1x1x48x128xf32, #tpu.memory_space<vmem>>, vector<1x1x48x128xf32>
      %116 = vector.shape_cast %115 : vector<1x1x48x128xf32> to vector<48x128xf32>
      %117 = vector.shape_cast %114 : vector<48x128xf32> to vector<1x1x48x128xf32>
      tpu.vector_store %arg8[%c0_68, %c0_69, %c0_70, %c0_71], %117 {strides = array<i32>} : memref<1x1x48x128xf32, #tpu.memory_space<vmem>>, vector<1x1x48x128xf32>,
    } else {
    }
    return
  }
  func.func @transform_0(%arg0: i32, %arg1: i32, %arg2: i32) -> (i32, i32, i32, i32) {
    %0 = arith.addi %arg1, %arg2 : i32
    %c0_i32 = arith.constant 0 : i32
    %c0_i32_0 = arith.constant 0 : i32
    %c0_i32_1 = arith.constant 0 : i32
    return %arg0, %0, %c0_i32, %c0_i32_0 : i32, i32, i32, i32
  }
  func.func @transform_1(%arg0: i32, %arg1: i32, %arg2: i32) -> (i32, i32, i32) {
    %c0_i32 = arith.constant 0 : i32
    %c0_i32_0 = arith.constant 0 : i32
    %c0_i32_1 = arith.constant 0 : i32
    %c0_i32_2 = arith.constant 0 : i32
    return %c0_i32, %c0_i32_0, %c0_i32_1 : i32, i32, i32
  }
  func.func @transform_2(%arg0: i32, %arg1: i32, %arg2: i32) -> (i32, i32) {
    %c0_i32 = arith.constant 0 : i32
    %c0_i32_0 = arith.constant 0 : i32
    %c0_i32_1 = arith.constant 0 : i32
    return %c0_i32, %c0_i32_0 : i32, i32
  }
  func.func @transform_3(%arg0: i32, %arg1: i32, %arg2: i32) -> (i32, i32) {
    %c0_i32 = arith.constant 0 : i32
    %c0_i32_0 = arith.constant 0 : i32
    %c0_i32_1 = arith.constant 0 : i32
    return %c0_i32, %c0_i32_0 : i32, i32
  }
  func.func @transform_4(%arg0: i32, %arg1: i32, %arg2: i32) -> (i32, i32) {
    %c0_i32 = arith.constant 0 : i32
    %c0_i32_0 = arith.constant 0 : i32
    %c0_i32_1 = arith.constant 0 : i32
    return %c0_i32, %c0_i32_0 : i32, i32
  }
  func.func @transform_5(%arg0: i32, %arg1: i32, %arg2: i32) -> (i32, i32, i32, i32) {
    %c0_i32 = arith.constant 0 : i32
    %c0_i32_0 = arith.constant 0 : i32
    %c0_i32_1 = arith.constant 0 : i32
    return %arg0, %arg1, %c0_i32, %c0_i32_0 : i32, i32, i32, i32
  }
}

</mosaic_0001>

<bundles_post_ra>
// kernel: conv3d_block_forward.2
= control target key start
LH: loop header
LB: loop body
LE: loop exit
PB: predicated region body
PF: predicated region fallthrough
CT: control target
= control target key end

     0   :  { %vm14_vm0 = vcmask 57344   ;;  %vm146_vm1 = vcmask 64512   ;;  %v812_v0 = vmov 0.0   ;;  %s2130_s0 = inlined_call_operand.vmem [shape: f32[1024,8], index: 0, kind: input, shape index: {}]   ;;  %s2131_s1 = inlined_call_operand.vmem [shape: f32[1,8], index: 1, kind: output, shape index: {0}]   ;;  %s2132_s2 = inlined_call_operand.vmem [shape: f32[1,8], index: 2, kind: output, shape index: {1}]  }
   0x1   :  { %15 = vst.msk [vmem:[%s2131_s1] sm:$0x1] %vm14_vm0, %v812_v0  ;;  %16 = vst.msk [vmem:[%s2132_s2] sm:$0x1] %vm14_vm0, %v812_v0  ;;  %v839_v1 = vld [vmem:[%s2130_s0] sm:$0xff]  ;;  %v844_v2 = vld [vmem:[%s2130_s0 + $0x8] sm:$0xff] }
   0x2   :  { %v849_v3 = vld [vmem:[%s2130_s0 + $0x10] sm:$0xff]  ;;  %v147_v4 = vsel %vm146_vm1, %v839_v1, 0.0  ;;  %v148_v5 = vsel %vm146_vm1, %v844_v2, 0.0  ;;  %v860_v7 = vld [vmem:[%s2130_s0 + $0x18] sm:$0xff]  ;;  %v867_v10 = vld [vmem:[%s2130_s0 + $0x20] sm:$0xff] }
   0x3   :  { %v150_v6 = vsel %vm146_vm1, %v849_v3, 0.0  ;;  %v149_v8 = vadd.f32 %v148_v5, %v147_v4  ;;  %v152_v9 = vsel %vm146_vm1, %v860_v7, 0.0  ;;  %v154_v12 = vsel %vm146_vm1, %v867_v10, 0.0  ;;  %v874_v13 = vld [vmem:[%s2130_s0 + $0x28] sm:$0xff]  ;;  %v881_v16 = vld [vmem:[%s2130_s0 + $0x30] sm:$0xff]  ;;  %v888_v19 = vld [vmem:[%s2130_s0 + $0x38] sm:$0xff] }
   0x4   :  { %v156_v15 = vsel %vm146_vm1, %v874_v13, 0.0  ;;  %v158_v18 = vsel %vm146_vm1, %v881_v16, 0.0  ;;  %v160_v21 = vsel %vm146_vm1, %v888_v19, 0.0  ;;  %v895_v22 = vld [vmem:[%s2130_s0 + $0x40] sm:$0xff]  ;;  %v902_v25 = vld [vmem:[%s2130_s0 + $0x48] sm:$0xff]  ;;  %v909_v28 = vld [vmem:[%s2130_s0 + $0x50] sm:$0xff] }
   0x5   :  { %v151_v11 = vadd.f32 %v150_v6, %v149_v8  ;;  %v162_v24 = vsel %vm146_vm1, %v895_v22, 0.0  ;;  %v164_v27 = vsel %vm146_vm1, %v902_v25, 0.0  ;;  %v166_v30 = vsel %vm146_vm1, %v909_v28, 0.0  ;;  %v916_v31 = vld [vmem:[%s2130_s0 + $0x58] sm:$0xff]  ;;  %v923_v34 = vld [vmem:[%s2130_s0 + $0x60] sm:$0xff]  ;;  %v930_v37 = vld [vmem:[%s2130_s0 + $0x68] sm:$0xff] }
   0x6   :  { %v168_v33 = vsel %vm146_vm1, %v916_v31, 0.0  ;;  %v170_v36 = vsel %vm146_vm1, %v923_v34, 0.0  ;;  %v172_v39 = vsel %vm146_vm1, %v930_v37, 0.0  ;;  %v937_v40 = vld [vmem:[%s2130_s0 + $0x70] sm:$0xff]  ;;  %v944_v43 = vld [vmem:[%s2130_s0 + $0x78] sm:$0xff]  ;;  %v951_v46 = vld [vmem:[%s2130_s0 + $0x80] sm:$0xff] }
   0x7   :  { %v153_v14 = vadd.f32 %v152_v9, %v151_v11  ;;  %v174_v42 = vsel %vm146_vm1, %v937_v40, 0.0  ;;  %v176_v45 = vsel %vm146_vm1, %v944_v43, 0.0  ;;  %v178_v48 = vsel %vm146_vm1, %v951_v46, 0.0  ;;  %v958_v49 = vld [vmem:[%s2130_s0 + $0x88] sm:$0xff]  ;;  %v965_v52 = vld [vmem:[%s2130_s0 + $0x90] sm:$0xff]  ;;  %v972_v55 = vld [vmem:[%s2130_s0 + $0x98] sm:$0xff] }
   0x8   :  { %v180_v51 = vsel %vm146_vm1, %v958_v49, 0.0  ;;  %v182_v54 = vsel %vm146_vm1, %v965_v52, 0.0  ;;  %v184_v57 = vsel %vm146_vm1, %v972_v55, 0.0  ;;  %v979_v58 = vld [vmem:[%s2130_s0 + $0xa0] sm:$0xff]  ;;  %v986_v61 = vld [vmem:[%s2130_s0 + $0xa8] sm:$0xff]  ;;  %v993_v0 = vld [vmem:[%s2130_s0 + $0xb0] sm:$0xff] }
   0x9   :  { %v155_v17 = vadd.f32 %v154_v12, %v153_v14  ;;  %v186_v60 = vsel %vm146_vm1, %v979_v58, 0.0  ;;  %v188_v63 = vsel %vm146_vm1, %v986_v61, 0.0  ;;  %v190_v5 = vsel %vm146_vm1, %v993_v0, 0.0  ;;  %v1000_v6 = vld [vmem:[%s2130_s0 + $0xb8] sm:$0xff]  ;;  %v1007_v11 = vld [vmem:[%s2130_s0 + $0xc0] sm:$0xff] }
   0xa   :  { %v192_v9 = vsel %vm146_vm1, %v1000_v6, 0.0  ;;  %v194_v14 = vsel %vm146_vm1, %v1007_v11, 0.0 }
   0xb   :  { %v157_v20 = vadd.f32 %v156_v15, %v155_v17  ;;  %v1014_v15 = vld [vmem:[%s2130_s0 + $0xc8] sm:$0xff] }
   0xd   :  { %v159_v23 = vadd.f32 %v158_v18, %v157_v20  ;;  %v196_v18 = vsel %vm146_vm1, %v1014_v15, 0.0  ;;  %v1021_v20 = vld [vmem:[%s2130_s0 + $0xd0] sm:$0xff] }
   0xf   :  { %v161_v26 = vadd.f32 %v160_v21, %v159_v23  ;;  %v198_v23 = vsel %vm146_vm1, %v1021_v20, 0.0 }
  0x11   :  { %v163_v29 = vadd.f32 %v162_v24, %v161_v26  ;;  %v412_v24 = vmul.f32 %v839_v1, %v839_v1  ;;  %v413_v26 = vmul.f32 %v844_v2, %v844_v2  ;;  %v1043_v1 = vld [vmem:[%s2130_s0 + $0xe0] sm:$0xff] }
  0x13   :  { %v165_v32 = vadd.f32 %v164_v27, %v163_v29  ;;  %v414_v27 = vmul.f32 %v849_v3, %v849_v3  ;;  %v1034_v29 = vld [vmem:[%s2130_s0 + $0xd8] sm:$0xff]  ;;  %v416_v3 = vmul.f32 %v867_v10, %v867_v10  ;;  %v417_v10 = vmul.f32 %v874_v13, %v874_v13 }
  0x14   :  { %v1075_v13 = vld [vmem:[%s2130_s0 + $0xf8] sm:$0xff] }
  0x15   :  { %v167_v35 = vadd.f32 %v166_v30, %v165_v32  ;;  %v200_v32 = vsel %vm146_vm1, %v1034_v29, 0.0 }
  0x17   :  { %v169_v38 = vadd.f32 %v168_v33, %v167_v35  ;;  %v415_v33 = vmul.f32 %v860_v7, %v860_v7  ;;  %v202_v35 = vsel %vm146_vm1, %v1043_v1, 0.0  ;;  %v1055_v7 = vld [vmem:[%s2130_s0 + $0xe8] sm:$0xff] }
  0x19   :  { %v171_v41 = vadd.f32 %v170_v36, %v169_v38  ;;  %v540_v36 = vsel %vm146_vm1, %v412_v24, 0.0  ;;  %v541_v38 = vsel %vm146_vm1, %v413_v26, 0.0 }
  0x1b   :  { %v173_v44 = vadd.f32 %v172_v39, %v171_v41  ;;  %v543_v39 = vsel %vm146_vm1, %v414_v27, 0.0  ;;  %v422_v27 = vmul.f32 %v909_v28, %v909_v28  ;;  %v1125_v28 = vld [vmem:[%s2130_s0 + $0x120] sm:$0xff] }
  0x1d   :  { %v175_v47 = vadd.f32 %v174_v42, %v173_v44  ;;  %v542_v42 = vadd.f32 %v541_v38, %v540_v36  ;;  %v204_v44 = vsel %vm146_vm1, %v1055_v7, 0.0 }
  0x1f   :  { %v177_v50 = vadd.f32 %v176_v45, %v175_v47  ;;  %v545_v45 = vsel %vm146_vm1, %v415_v33, 0.0  ;;  %v1065_v47 = vld [vmem:[%s2130_s0 + $0xf0] sm:$0xff] }
  0x21   :  { %v179_v53 = vadd.f32 %v178_v48, %v177_v50  ;;  %v544_v50 = vadd.f32 %v543_v39, %v542_v42  ;;  %v218_v39 = vsel %vm146_vm1, %v1125_v28, 0.0  ;;  %v559_v42 = vsel %vm146_vm1, %v422_v27, 0.0 }
  0x23   :  { %v181_v56 = vadd.f32 %v180_v51, %v179_v53  ;;  %v206_v51 = vsel %vm146_vm1, %v1065_v47, 0.0  ;;  %v418_v53 = vmul.f32 %v881_v16, %v881_v16  ;;  %v1085_v16 = vld [vmem:[%s2130_s0 + $0x100] sm:$0xff] }
  0x25   :  { %v183_v59 = vadd.f32 %v182_v54, %v181_v56  ;;  %v547_v54 = vsel %vm146_vm1, %v416_v3, 0.0  ;;  %v423_v3 = vmul.f32 %v916_v31, %v916_v31  ;;  %v1135_v31 = vld [vmem:[%s2130_s0 + $0x128] sm:$0xff] }
  0x27   :  { %v185_v62 = vadd.f32 %v184_v57, %v183_v59  ;;  %v546_v57 = vadd.f32 %v545_v45, %v544_v50  ;;  %v208_v59 = vsel %vm146_vm1, %v1075_v13, 0.0  ;;  %v220_v45 = vsel %vm146_vm1, %v1135_v31, 0.0 }
  0x28   :  { %v561_v50 = vsel %vm146_vm1, %v423_v3, 0.0 }
  0x29   :  { %v187_v4 = vadd.f32 %v186_v60, %v185_v62  ;;  %v419_v60 = vmul.f32 %v888_v19, %v888_v19  ;;  %v549_v62 = vsel %vm146_vm1, %v417_v10, 0.0  ;;  %v1095_v19 = vld [vmem:[%s2130_s0 + $0x108] sm:$0xff] }
  0x2b   :  { %v189_v8 = vadd.f32 %v188_v63, %v187_v4  ;;  %v548_v4 = vadd.f32 %v547_v54, %v546_v57 }
  0x2d   :  { %v191_v12 = vadd.f32 %v190_v5, %v189_v8  ;;  %v210_v5 = vsel %vm146_vm1, %v1085_v16, 0.0  ;;  %v420_v8 = vmul.f32 %v895_v22, %v895_v22  ;;  %v1105_v22 = vld [vmem:[%s2130_s0 + $0x110] sm:$0xff] }
  0x2e   :  { %v214_v26 = vsel %vm146_vm1, %v1105_v22, 0.0 }
  0x2f   :  { %v193_v17 = vadd.f32 %v192_v9, %v191_v12  ;;  %v551_v9 = vsel %vm146_vm1, %v418_v53, 0.0 }
  0x31   :  { %v195_v21 = vadd.f32 %v194_v14, %v193_v17  ;;  %v550_v14 = vadd.f32 %v549_v62, %v548_v4  ;;  %v212_v17 = vsel %vm146_vm1, %v1095_v19, 0.0 }
  0x33   :  { %v197_v30 = vadd.f32 %v196_v18, %v195_v21  ;;  %v421_v18 = vmul.f32 %v902_v25, %v902_v25  ;;  %v553_v21 = vsel %vm146_vm1, %v419_v60, 0.0  ;;  %v552_v24 = vadd.f32 %v551_v9, %v550_v14  ;;  %v1115_v25 = vld [vmem:[%s2130_s0 + $0x118] sm:$0xff] }
  0x35   :  { %v199_v2 = vadd.f32 %v198_v23, %v197_v30  ;;  %v555_v30 = vsel %vm146_vm1, %v420_v8, 0.0  ;;  %v554_v33 = vadd.f32 %v553_v21, %v552_v24 }
  0x37   :  { %v201_v41 = vadd.f32 %v200_v32, %v199_v2  ;;  %v216_v2 = vsel %vm146_vm1, %v1115_v25, 0.0  ;;  %v556_v38 = vadd.f32 %v555_v30, %v554_v33 }
  0x39   :  { %v203_v48 = vadd.f32 %v202_v35, %v201_v41  ;;  %v557_v35 = vsel %vm146_vm1, %v421_v18, 0.0  ;;  %v424_v41 = vmul.f32 %v923_v34, %v923_v34  ;;  %v1145_v34 = vld [vmem:[%s2130_s0 + $0x130] sm:$0xff] }
  0x3a   :  { %v558_v10 = vadd.f32 %v557_v35, %v556_v38  ;;  %v222_v54 = vsel %vm146_vm1, %v1145_v34, 0.0 }
  0x3b   :  { %v205_v56 = vadd.f32 %v204_v44, %v203_v48  ;;  %v425_v48 = vmul.f32 %v930_v37, %v930_v37  ;;  %v563_v57 = vsel %vm146_vm1, %v424_v41, 0.0  ;;  %v1155_v37 = vld [vmem:[%s2130_s0 + $0x138] sm:$0xff] }
  0x3c   :  { %v560_v53 = vadd.f32 %v559_v42, %v558_v10  ;;  %v224_v62 = vsel %vm146_vm1, %v1155_v37, 0.0 }
  0x3d   :  { %v207_v63 = vadd.f32 %v206_v51, %v205_v56  ;;  %v426_v56 = vmul.f32 %v937_v40, %v937_v40  ;;  %v565_v4 = vsel %vm146_vm1, %v425_v48, 0.0  ;;  %v1165_v40 = vld [vmem:[%s2130_s0 + $0x140] sm:$0xff] }
  0x3e   :  { %v562_v60 = vadd.f32 %v561_v50, %v560_v53  ;;  %v226_v9 = vsel %vm146_vm1, %v1165_v40, 0.0 }
  0x3f   :  { %v209_v12 = vadd.f32 %v208_v59, %v207_v63  ;;  %v427_v63 = vmul.f32 %v944_v43, %v944_v43  ;;  %v567_v14 = vsel %vm146_vm1, %v426_v56, 0.0  ;;  %v1175_v43 = vld [vmem:[%s2130_s0 + $0x148] sm:$0xff] }
  0x40   :  { %v564_v8 = vadd.f32 %v563_v57, %v562_v60  ;;  %v228_v21 = vsel %vm146_vm1, %v1175_v43, 0.0 }
  0x41   :  { %v211_v23 = vadd.f32 %v210_v5, %v209_v12  ;;  %v428_v12 = vmul.f32 %v951_v46, %v951_v46  ;;  %v569_v24 = vsel %vm146_vm1, %v427_v63, 0.0  ;;  %v1185_v46 = vld [vmem:[%s2130_s0 + $0x150] sm:$0xff] }
  0x42   :  { %v566_v18 = vadd.f32 %v565_v4, %v564_v8  ;;  %v230_v30 = vsel %vm146_vm1, %v1185_v46, 0.0 }
  0x43   :  { %v213_v32 = vadd.f32 %v212_v17, %v211_v23  ;;  %v429_v23 = vmul.f32 %v958_v49, %v958_v49  ;;  %v571_v33 = vsel %vm146_vm1, %v428_v12, 0.0  ;;  %v1195_v49 = vld [vmem:[%s2130_s0 + $0x158] sm:$0xff] }
  0x44   :  { %v568_v27 = vadd.f32 %v567_v14, %v566_v18  ;;  %v232_v35 = vsel %vm146_vm1, %v1195_v49, 0.0 }
  0x45   :  { %v215_v36 = vadd.f32 %v214_v26, %v213_v32  ;;  %v430_v32 = vmul.f32 %v965_v52, %v965_v52  ;;  %v573_v38 = vsel %vm146_vm1, %v429_v23, 0.0  ;;  %v1205_v52 = vld [vmem:[%s2130_s0 + $0x160] sm:$0xff] }
  0x46   :  { %v570_v3 = vadd.f32 %v569_v24, %v568_v27  ;;  %v234_v42 = vsel %vm146_vm1, %v1205_v52, 0.0 }
  0x47   :  { %v217_v44 = vadd.f32 %v216_v2, %v215_v36  ;;  %v431_v36 = vmul.f32 %v972_v55, %v972_v55  ;;  %v575_v10 = vsel %vm146_vm1, %v430_v32, 0.0  ;;  %v1215_v55 = vld [vmem:[%s2130_s0 + $0x168] sm:$0xff] }
  0x48   :  { %v572_v41 = vadd.f32 %v571_v33, %v570_v3  ;;  %v236_v50 = vsel %vm146_vm1, %v1215_v55, 0.0 }
  0x49   :  { %v219_v51 = vadd.f32 %v218_v39, %v217_v44  ;;  %v432_v44 = vmul.f32 %v979_v58, %v979_v58  ;;  %v577_v53 = vsel %vm146_vm1, %v431_v36, 0.0  ;;  %v1225_v58 = vld [vmem:[%s2130_s0 + $0x170] sm:$0xff] }
  0x4a   :  { %v574_v48 = vadd.f32 %v573_v38, %v572_v41  ;;  %v238_v57 = vsel %vm146_vm1, %v1225_v58, 0.0 }
  0x4b   :  { %v221_v59 = vadd.f32 %v220_v45, %v219_v51  ;;  %v433_v51 = vmul.f32 %v986_v61, %v986_v61  ;;  %v579_v60 = vsel %vm146_vm1, %v432_v44, 0.0  ;;  %v1235_v61 = vld [vmem:[%s2130_s0 + $0x178] sm:$0xff] }
  0x4c   :  { %v576_v56 = vadd.f32 %v575_v10, %v574_v48  ;;  %v240_v4 = vsel %vm146_vm1, %v1235_v61, 0.0 }
  0x4d   :  { %v223_v5 = vadd.f32 %v222_v54, %v221_v59  ;;  %v434_v59 = vmul.f32 %v993_v0, %v993_v0  ;;  %v581_v8 = vsel %vm146_vm1, %v433_v51, 0.0  ;;  %v1245_v0 = vld [vmem:[%s2130_s0 + $0x180] sm:$0xff] }
  0x4e   :  { %v578_v63 = vadd.f32 %v577_v53, %v576_v56  ;;  %v242_v14 = vsel %vm146_vm1, %v1245_v0, 0.0 }
  0x4f   :  { %v225_v17 = vadd.f32 %v224_v62, %v223_v5  ;;  %v435_v5 = vmul.f32 %v1000_v6, %v1000_v6  ;;  %v583_v18 = vsel %vm146_vm1, %v434_v59, 0.0  ;;  %v1255_v6 = vld [vmem:[%s2130_s0 + $0x188] sm:$0xff] }
  0x50   :  { %v580_v12 = vadd.f32 %v579_v60, %v578_v63  ;;  %v244_v24 = vsel %vm146_vm1, %v1255_v6, 0.0 }
  0x51   :  { %v227_v26 = vadd.f32 %v226_v9, %v225_v17  ;;  %v436_v17 = vmul.f32 %v1007_v11, %v1007_v11  ;;  %v585_v27 = vsel %vm146_vm1, %v435_v5, 0.0  ;;  %v1265_v11 = vld [vmem:[%s2130_s0 + $0x190] sm:$0xff] }
  0x52   :  { %v582_v23 = vadd.f32 %v581_v8, %v580_v12  ;;  %v246_v33 = vsel %vm146_vm1, %v1265_v11, 0.0 }
  0x53   :  { %v229_v2 = vadd.f32 %v228_v21, %v227_v26  ;;  %v437_v26 = vmul.f32 %v1014_v15, %v1014_v15  ;;  %v587_v3 = vsel %vm146_vm1, %v436_v17, 0.0  ;;  %v1275_v15 = vld [vmem:[%s2130_s0 + $0x198] sm:$0xff] }
  0x54   :  { %v584_v32 = vadd.f32 %v583_v18, %v582_v23  ;;  %v248_v38 = vsel %vm146_vm1, %v1275_v15, 0.0 }
  0x55   :  { %v231_v39 = vadd.f32 %v230_v30, %v229_v2  ;;  %v438_v2 = vmul.f32 %v1021_v20, %v1021_v20  ;;  %v589_v41 = vsel %vm146_vm1, %v437_v26, 0.0  ;;  %v1285_v20 = vld [vmem:[%s2130_s0 + $0x1a0] sm:$0xff] }
  0x56   :  { %v586_v36 = vadd.f32 %v585_v27, %v584_v32  ;;  %v250_v10 = vsel %vm146_vm1, %v1285_v20, 0.0 }
  0x57   :  { %v233_v45 = vadd.f32 %v232_v35, %v231_v39  ;;  %v439_v39 = vmul.f32 %v1034_v29, %v1034_v29  ;;  %v591_v48 = vsel %vm146_vm1, %v438_v2, 0.0  ;;  %v1295_v29 = vld [vmem:[%s2130_s0 + $0x1a8] sm:$0xff] }
  0x58   :  { %v588_v44 = vadd.f32 %v587_v3, %v586_v36  ;;  %v252_v53 = vsel %vm146_vm1, %v1295_v29, 0.0 }
  0x59   :  { %v235_v54 = vadd.f32 %v234_v42, %v233_v45  ;;  %v440_v45 = vmul.f32 %v1043_v1, %v1043_v1  ;;  %v593_v56 = vsel %vm146_vm1, %v439_v39, 0.0  ;;  %v1305_v1 = vld [vmem:[%s2130_s0 + $0x1b0] sm:$0xff] }
  0x5a   :  { %v590_v51 = vadd.f32 %v589_v41, %v588_v44  ;;  %v254_v60 = vsel %vm146_vm1, %v1305_v1, 0.0 }
  0x5b   :  { %v237_v62 = vadd.f32 %v236_v50, %v235_v54  ;;  %v441_v54 = vmul.f32 %v1055_v7, %v1055_v7  ;;  %v595_v63 = vsel %vm146_vm1, %v440_v45, 0.0  ;;  %v1315_v7 = vld [vmem:[%s2130_s0 + $0x1b8] sm:$0xff] }
  0x5c   :  { %v592_v59 = vadd.f32 %v591_v48, %v590_v51  ;;  %v256_v8 = vsel %vm146_vm1, %v1315_v7, 0.0 }
  0x5d   :  { %v239_v9 = vadd.f32 %v238_v57, %v237_v62  ;;  %v442_v62 = vmul.f32 %v1065_v47, %v1065_v47  ;;  %v597_v12 = vsel %vm146_vm1, %v441_v54, 0.0  ;;  %v1325_v47 = vld [vmem:[%s2130_s0 + $0x1c0] sm:$0xff] }
  0x5e   :  { %v594_v5 = vadd.f32 %v593_v56, %v592_v59  ;;  %v258_v18 = vsel %vm146_vm1, %v1325_v47, 0.0 }
  0x5f   :  { %v241_v21 = vadd.f32 %v240_v4, %v239_v9  ;;  %v443_v9 = vmul.f32 %v1075_v13, %v1075_v13  ;;  %v599_v23 = vsel %vm146_vm1, %v442_v62, 0.0  ;;  %v1335_v13 = vld [vmem:[%s2130_s0 + $0x1c8] sm:$0xff] }
  0x60   :  { %v596_v17 = vadd.f32 %v595_v63, %v594_v5  ;;  %v260_v27 = vsel %vm146_vm1, %v1335_v13, 0.0 }
  0x61   :  { %v243_v30 = vadd.f32 %v242_v14, %v241_v21  ;;  %v444_v21 = vmul.f32 %v1085_v16, %v1085_v16  ;;  %v601_v32 = vsel %vm146_vm1, %v443_v9, 0.0  ;;  %v1345_v16 = vld [vmem:[%s2130_s0 + $0x1d0] sm:$0xff] }
  0x62   :  { %v598_v26 = vadd.f32 %v597_v12, %v596_v17  ;;  %v262_v3 = vsel %vm146_vm1, %v1345_v16, 0.0 }
  0x63   :  { %v245_v35 = vadd.f32 %v244_v24, %v243_v30  ;;  %v445_v30 = vmul.f32 %v1095_v19, %v1095_v19  ;;  %v603_v36 = vsel %vm146_vm1, %v444_v21, 0.0  ;;  %v1355_v19 = vld [vmem:[%s2130_s0 + $0x1d8] sm:$0xff] }
  0x64   :  { %v600_v2 = vadd.f32 %v599_v23, %v598_v26  ;;  %v264_v41 = vsel %vm146_vm1, %v1355_v19, 0.0 }
  0x65   :  { %v247_v42 = vadd.f32 %v246_v33, %v245_v35  ;;  %v446_v35 = vmul.f32 %v1105_v22, %v1105_v22  ;;  %v605_v44 = vsel %vm146_vm1, %v445_v30, 0.0  ;;  %v1365_v22 = vld [vmem:[%s2130_s0 + $0x1e0] sm:$0xff] }
  0x66   :  { %v602_v39 = vadd.f32 %v601_v32, %v600_v2  ;;  %v266_v48 = vsel %vm146_vm1, %v1365_v22, 0.0 }
  0x67   :  { %v249_v50 = vadd.f32 %v248_v38, %v247_v42  ;;  %v447_v42 = vmul.f32 %v1115_v25, %v1115_v25  ;;  %v607_v51 = vsel %vm146_vm1, %v446_v35, 0.0  ;;  %v1375_v25 = vld [vmem:[%s2130_s0 + $0x1e8] sm:$0xff] }
  0x68   :  { %v604_v45 = vadd.f32 %v603_v36, %v602_v39  ;;  %v268_v56 = vsel %vm146_vm1, %v1375_v25, 0.0 }
  0x69   :  { %v251_v57 = vadd.f32 %v250_v10, %v249_v50  ;;  %v448_v50 = vmul.f32 %v1125_v28, %v1125_v28  ;;  %v609_v59 = vsel %vm146_vm1, %v447_v42, 0.0  ;;  %v1385_v28 = vld [vmem:[%s2130_s0 + $0x1f0] sm:$0xff] }
  0x6a   :  { %v606_v54 = vadd.f32 %v605_v44, %v604_v45  ;;  %v270_v63 = vsel %vm146_vm1, %v1385_v28, 0.0 }
  0x6b   :  { %v253_v4 = vadd.f32 %v252_v53, %v251_v57  ;;  %v449_v57 = vmul.f32 %v1135_v31, %v1135_v31  ;;  %v611_v5 = vsel %vm146_vm1, %v448_v50, 0.0  ;;  %v1395_v31 = vld [vmem:[%s2130_s0 + $0x1f8] sm:$0xff] }
  0x6c   :  { %v608_v62 = vadd.f32 %v607_v51, %v606_v54  ;;  %v272_v12 = vsel %vm146_vm1, %v1395_v31, 0.0 }
  0x6d   :  { %v255_v14 = vadd.f32 %v254_v60, %v253_v4  ;;  %v450_v4 = vmul.f32 %v1145_v34, %v1145_v34  ;;  %v613_v17 = vsel %vm146_vm1, %v449_v57, 0.0  ;;  %v1405_v34 = vld [vmem:[%s2130_s0 + $0x200] sm:$0xff] }
  0x6e   :  { %v610_v9 = vadd.f32 %v609_v59, %v608_v62  ;;  %v274_v23 = vsel %vm146_vm1, %v1405_v34, 0.0 }
  0x6f   :  { %v257_v24 = vadd.f32 %v256_v8, %v255_v14  ;;  %v451_v14 = vmul.f32 %v1155_v37, %v1155_v37  ;;  %v615_v26 = vsel %vm146_vm1, %v450_v4, 0.0  ;;  %v1415_v37 = vld [vmem:[%s2130_s0 + $0x208] sm:$0xff] }
  0x70   :  { %v612_v21 = vadd.f32 %v611_v5, %v610_v9  ;;  %v276_v32 = vsel %vm146_vm1, %v1415_v37, 0.0 }
  0x71   :  { %v259_v33 = vadd.f32 %v258_v18, %v257_v24  ;;  %v452_v24 = vmul.f32 %v1165_v40, %v1165_v40  ;;  %v617_v2 = vsel %vm146_vm1, %v451_v14, 0.0  ;;  %v1425_v40 = vld [vmem:[%s2130_s0 + $0x210] sm:$0xff] }
  0x72   :  { %v614_v30 = vadd.f32 %v613_v17, %v612_v21  ;;  %v278_v36 = vsel %vm146_vm1, %v1425_v40, 0.0 }
  0x73   :  { %v261_v38 = vadd.f32 %v260_v27, %v259_v33  ;;  %v453_v33 = vmul.f32 %v1175_v43, %v1175_v43  ;;  %v619_v39 = vsel %vm146_vm1, %v452_v24, 0.0  ;;  %v1435_v43 = vld [vmem:[%s2130_s0 + $0x218] sm:$0xff] }
  0x74   :  { %v616_v35 = vadd.f32 %v615_v26, %v614_v30  ;;  %v280_v44 = vsel %vm146_vm1, %v1435_v43, 0.0 }
  0x75   :  { %v263_v10 = vadd.f32 %v262_v3, %v261_v38  ;;  %v454_v38 = vmul.f32 %v1185_v46, %v1185_v46  ;;  %v621_v45 = vsel %vm146_vm1, %v453_v33, 0.0  ;;  %v1445_v46 = vld [vmem:[%s2130_s0 + $0x220] sm:$0xff] }
  0x76   :  { %v618_v42 = vadd.f32 %v617_v2, %v616_v35  ;;  %v282_v51 = vsel %vm146_vm1, %v1445_v46, 0.0 }
  0x77   :  { %v265_v53 = vadd.f32 %v264_v41, %v263_v10  ;;  %v455_v10 = vmul.f32 %v1195_v49, %v1195_v49  ;;  %v623_v54 = vsel %vm146_vm1, %v454_v38, 0.0  ;;  %v1455_v49 = vld [vmem:[%s2130_s0 + $0x228] sm:$0xff] }
  0x78   :  { %v620_v50 = vadd.f32 %v619_v39, %v618_v42  ;;  %v284_v59 = vsel %vm146_vm1, %v1455_v49, 0.0 }
  0x79   :  { %v267_v60 = vadd.f32 %v266_v48, %v265_v53  ;;  %v456_v53 = vmul.f32 %v1205_v52, %v1205_v52  ;;  %v625_v62 = vsel %vm146_vm1, %v455_v10, 0.0  ;;  %v1465_v52 = vld [vmem:[%s2130_s0 + $0x230] sm:$0xff] }
  0x7a   :  { %v622_v57 = vadd.f32 %v621_v45, %v620_v50  ;;  %v286_v5 = vsel %vm146_vm1, %v1465_v52, 0.0 }
  0x7b   :  { %v269_v8 = vadd.f32 %v268_v56, %v267_v60  ;;  %v457_v60 = vmul.f32 %v1215_v55, %v1215_v55  ;;  %v627_v9 = vsel %vm146_vm1, %v456_v53, 0.0  ;;  %v1475_v55 = vld [vmem:[%s2130_s0 + $0x238] sm:$0xff] }
  0x7c   :  { %v624_v4 = vadd.f32 %v623_v54, %v622_v57  ;;  %v288_v17 = vsel %vm146_vm1, %v1475_v55, 0.0 }
  0x7d   :  { %v271_v18 = vadd.f32 %v270_v63, %v269_v8  ;;  %v458_v8 = vmul.f32 %v1225_v58, %v1225_v58  ;;  %v629_v21 = vsel %vm146_vm1, %v457_v60, 0.0  ;;  %v1485_v58 = vld [vmem:[%s2130_s0 + $0x240] sm:$0xff] }
  0x7e   :  { %v626_v14 = vadd.f32 %v625_v62, %v624_v4  ;;  %v290_v26 = vsel %vm146_vm1, %v1485_v58, 0.0 }
  0x7f   :  { %v273_v27 = vadd.f32 %v272_v12, %v271_v18  ;;  %v459_v18 = vmul.f32 %v1235_v61, %v1235_v61  ;;  %v631_v30 = vsel %vm146_vm1, %v458_v8, 0.0  ;;  %v1495_v61 = vld [vmem:[%s2130_s0 + $0x248] sm:$0xff] }
  0x80   :  { %v628_v24 = vadd.f32 %v627_v9, %v626_v14  ;;  %v292_v2 = vsel %vm146_vm1, %v1495_v61, 0.0 }
  0x81   :  { %v275_v3 = vadd.f32 %v274_v23, %v273_v27  ;;  %v460_v27 = vmul.f32 %v1245_v0, %v1245_v0  ;;  %v633_v35 = vsel %vm146_vm1, %v459_v18, 0.0  ;;  %v1505_v0 = vld [vmem:[%s2130_s0 + $0x250] sm:$0xff] }
  0x82   :  { %v630_v33 = vadd.f32 %v629_v21, %v628_v24  ;;  %v294_v39 = vsel %vm146_vm1, %v1505_v0, 0.0 }
  0x83   :  { %v277_v41 = vadd.f32 %v276_v32, %v275_v3  ;;  %v461_v3 = vmul.f32 %v1255_v6, %v1255_v6  ;;  %v635_v42 = vsel %vm146_vm1, %v460_v27, 0.0  ;;  %v1515_v6 = vld [vmem:[%s2130_s0 + $0x258] sm:$0xff] }
  0x84   :  { %v632_v38 = vadd.f32 %v631_v30, %v630_v33  ;;  %v296_v45 = vsel %vm146_vm1, %v1515_v6, 0.0 }
  0x85   :  { %v279_v48 = vadd.f32 %v278_v36, %v277_v41  ;;  %v462_v41 = vmul.f32 %v1265_v11, %v1265_v11  ;;  %v637_v50 = vsel %vm146_vm1, %v461_v3, 0.0  ;;  %v1525_v11 = vld [vmem:[%s2130_s0 + $0x260] sm:$0xff] }
  0x86   :  { %v634_v10 = vadd.f32 %v633_v35, %v632_v38  ;;  %v298_v54 = vsel %vm146_vm1, %v1525_v11, 0.0 }
  0x87   :  { %v281_v56 = vadd.f32 %v280_v44, %v279_v48  ;;  %v463_v48 = vmul.f32 %v1275_v15, %v1275_v15  ;;  %v639_v57 = vsel %vm146_vm1, %v462_v41, 0.0  ;;  %v1535_v15 = vld [vmem:[%s2130_s0 + $0x268] sm:$0xff] }
  0x88   :  { %v636_v53 = vadd.f32 %v635_v42, %v634_v10  ;;  %v300_v62 = vsel %vm146_vm1, %v1535_v15, 0.0 }
  0x89   :  { %v283_v63 = vadd.f32 %v282_v51, %v281_v56  ;;  %v464_v56 = vmul.f32 %v1285_v20, %v1285_v20  ;;  %v641_v4 = vsel %vm146_vm1, %v463_v48, 0.0  ;;  %v1545_v20 = vld [vmem:[%s2130_s0 + $0x270] sm:$0xff] }
  0x8a   :  { %v638_v60 = vadd.f32 %v637_v50, %v636_v53  ;;  %v302_v9 = vsel %vm146_vm1, %v1545_v20, 0.0 }
  0x8b   :  { %v285_v12 = vadd.f32 %v284_v59, %v283_v63  ;;  %v465_v63 = vmul.f32 %v1295_v29, %v1295_v29  ;;  %v643_v14 = vsel %vm146_vm1, %v464_v56, 0.0  ;;  %v1555_v29 = vld [vmem:[%s2130_s0 + $0x278] sm:$0xff] }
  0x8c   :  { %v640_v8 = vadd.f32 %v639_v57, %v638_v60  ;;  %v304_v21 = vsel %vm146_vm1, %v1555_v29, 0.0 }
  0x8d   :  { %v287_v23 = vadd.f32 %v286_v5, %v285_v12  ;;  %v466_v12 = vmul.f32 %v1305_v1, %v1305_v1  ;;  %v645_v24 = vsel %vm146_vm1, %v465_v63, 0.0  ;;  %v1565_v1 = vld [vmem:[%s2130_s0 + $0x280] sm:$0xff] }
  0x8e   :  { %v642_v18 = vadd.f32 %v641_v4, %v640_v8  ;;  %v306_v30 = vsel %vm146_vm1, %v1565_v1, 0.0 }
  0x8f   :  { %v289_v32 = vadd.f32 %v288_v17, %v287_v23  ;;  %v467_v23 = vmul.f32 %v1315_v7, %v1315_v7  ;;  %v647_v33 = vsel %vm146_vm1, %v466_v12, 0.0  ;;  %v1575_v7 = vld [vmem:[%s2130_s0 + $0x288] sm:$0xff] }
  0x90   :  { %v644_v27 = vadd.f32 %v643_v14, %v642_v18  ;;  %v308_v35 = vsel %vm146_vm1, %v1575_v7, 0.0 }
  0x91   :  { %v291_v36 = vadd.f32 %v290_v26, %v289_v32  ;;  %v468_v32 = vmul.f32 %v1325_v47, %v1325_v47  ;;  %v649_v38 = vsel %vm146_vm1, %v467_v23, 0.0  ;;  %v1585_v47 = vld [vmem:[%s2130_s0 + $0x290] sm:$0xff] }
  0x92   :  { %v646_v3 = vadd.f32 %v645_v24, %v644_v27  ;;  %v310_v42 = vsel %vm146_vm1, %v1585_v47, 0.0 }
  0x93   :  { %v293_v44 = vadd.f32 %v292_v2, %v291_v36  ;;  %v469_v36 = vmul.f32 %v1335_v13, %v1335_v13  ;;  %v651_v10 = vsel %vm146_vm1, %v468_v32, 0.0  ;;  %v1595_v13 = vld [vmem:[%s2130_s0 + $0x298] sm:$0xff] }
  0x94   :  { %v648_v41 = vadd.f32 %v647_v33, %v646_v3  ;;  %v312_v50 = vsel %vm146_vm1, %v1595_v13, 0.0 }
  0x95   :  { %v295_v51 = vadd.f32 %v294_v39, %v293_v44  ;;  %v470_v44 = vmul.f32 %v1345_v16, %v1345_v16  ;;  %v653_v53 = vsel %vm146_vm1, %v469_v36, 0.0  ;;  %v1605_v16 = vld [vmem:[%s2130_s0 + $0x2a0] sm:$0xff] }
  0x96   :  { %v650_v48 = vadd.f32 %v649_v38, %v648_v41  ;;  %v314_v57 = vsel %vm146_vm1, %v1605_v16, 0.0 }
  0x97   :  { %v297_v59 = vadd.f32 %v296_v45, %v295_v51  ;;  %v471_v51 = vmul.f32 %v1355_v19, %v1355_v19  ;;  %v655_v60 = vsel %vm146_vm1, %v470_v44, 0.0  ;;  %v1615_v19 = vld [vmem:[%s2130_s0 + $0x2a8] sm:$0xff] }
  0x98   :  { %v652_v56 = vadd.f32 %v651_v10, %v650_v48  ;;  %v316_v4 = vsel %vm146_vm1, %v1615_v19, 0.0 }
  0x99   :  { %v299_v5 = vadd.f32 %v298_v54, %v297_v59  ;;  %v472_v59 = vmul.f32 %v1365_v22, %v1365_v22  ;;  %v657_v8 = vsel %vm146_vm1, %v471_v51, 0.0  ;;  %v1625_v22 = vld [vmem:[%s2130_s0 + $0x2b0] sm:$0xff] }
  0x9a   :  { %v654_v63 = vadd.f32 %v653_v53, %v652_v56  ;;  %v318_v14 = vsel %vm146_vm1, %v1625_v22, 0.0 }
  0x9b   :  { %v301_v17 = vadd.f32 %v300_v62, %v299_v5  ;;  %v473_v5 = vmul.f32 %v1375_v25, %v1375_v25  ;;  %v659_v18 = vsel %vm146_vm1, %v472_v59, 0.0  ;;  %v1635_v25 = vld [vmem:[%s2130_s0 + $0x2b8] sm:$0xff] }
  0x9c   :  { %v656_v12 = vadd.f32 %v655_v60, %v654_v63  ;;  %v320_v24 = vsel %vm146_vm1, %v1635_v25, 0.0 }
  0x9d   :  { %v303_v26 = vadd.f32 %v302_v9, %v301_v17  ;;  %v474_v17 = vmul.f32 %v1385_v28, %v1385_v28  ;;  %v661_v27 = vsel %vm146_vm1, %v473_v5, 0.0  ;;  %v1645_v28 = vld [vmem:[%s2130_s0 + $0x2c0] sm:$0xff] }
  0x9e   :  { %v658_v23 = vadd.f32 %v657_v8, %v656_v12  ;;  %v322_v33 = vsel %vm146_vm1, %v1645_v28, 0.0 }
  0x9f   :  { %v305_v2 = vadd.f32 %v304_v21, %v303_v26  ;;  %v475_v26 = vmul.f32 %v1395_v31, %v1395_v31  ;;  %v663_v3 = vsel %vm146_vm1, %v474_v17, 0.0  ;;  %v1655_v31 = vld [vmem:[%s2130_s0 + $0x2c8] sm:$0xff] }
  0xa0   :  { %v660_v32 = vadd.f32 %v659_v18, %v658_v23  ;;  %v324_v38 = vsel %vm146_vm1, %v1655_v31, 0.0 }
  0xa1   :  { %v307_v39 = vadd.f32 %v306_v30, %v305_v2  ;;  %v476_v2 = vmul.f32 %v1405_v34, %v1405_v34  ;;  %v665_v41 = vsel %vm146_vm1, %v475_v26, 0.0  ;;  %v1665_v34 = vld [vmem:[%s2130_s0 + $0x2d0] sm:$0xff] }
  0xa2   :  { %v662_v36 = vadd.f32 %v661_v27, %v660_v32  ;;  %v326_v10 = vsel %vm146_vm1, %v1665_v34, 0.0 }
  0xa3   :  { %v309_v45 = vadd.f32 %v308_v35, %v307_v39  ;;  %v477_v39 = vmul.f32 %v1415_v37, %v1415_v37  ;;  %v667_v48 = vsel %vm146_vm1, %v476_v2, 0.0  ;;  %v1675_v37 = vld [vmem:[%s2130_s0 + $0x2d8] sm:$0xff] }
  0xa4   :  { %v664_v44 = vadd.f32 %v663_v3, %v662_v36  ;;  %v328_v53 = vsel %vm146_vm1, %v1675_v37, 0.0 }
  0xa5   :  { %v311_v54 = vadd.f32 %v310_v42, %v309_v45  ;;  %v478_v45 = vmul.f32 %v1425_v40, %v1425_v40  ;;  %v669_v56 = vsel %vm146_vm1, %v477_v39, 0.0  ;;  %v1685_v40 = vld [vmem:[%s2130_s0 + $0x2e0] sm:$0xff] }
  0xa6   :  { %v666_v51 = vadd.f32 %v665_v41, %v664_v44  ;;  %v330_v60 = vsel %vm146_vm1, %v1685_v40, 0.0 }
  0xa7   :  { %v313_v62 = vadd.f32 %v312_v50, %v311_v54  ;;  %v479_v54 = vmul.f32 %v1435_v43, %v1435_v43  ;;  %v671_v63 = vsel %vm146_vm1, %v478_v45, 0.0  ;;  %v1695_v43 = vld [vmem:[%s2130_s0 + $0x2e8] sm:$0xff] }
  0xa8   :  { %v668_v59 = vadd.f32 %v667_v48, %v666_v51  ;;  %v332_v8 = vsel %vm146_vm1, %v1695_v43, 0.0 }
  0xa9   :  { %v315_v9 = vadd.f32 %v314_v57, %v313_v62  ;;  %v480_v62 = vmul.f32 %v1445_v46, %v1445_v46  ;;  %v673_v12 = vsel %vm146_vm1, %v479_v54, 0.0  ;;  %v1705_v46 = vld [vmem:[%s2130_s0 + $0x2f0] sm:$0xff] }
  0xaa   :  { %v670_v5 = vadd.f32 %v669_v56, %v668_v59  ;;  %v334_v18 = vsel %vm146_vm1, %v1705_v46, 0.0 }
  0xab   :  { %v317_v21 = vadd.f32 %v316_v4, %v315_v9  ;;  %v481_v9 = vmul.f32 %v1455_v49, %v1455_v49  ;;  %v675_v23 = vsel %vm146_vm1, %v480_v62, 0.0  ;;  %v1715_v49 = vld [vmem:[%s2130_s0 + $0x2f8] sm:$0xff] }
  0xac   :  { %v672_v17 = vadd.f32 %v671_v63, %v670_v5  ;;  %v336_v27 = vsel %vm146_vm1, %v1715_v49, 0.0 }
  0xad   :  { %v319_v30 = vadd.f32 %v318_v14, %v317_v21  ;;  %v482_v21 = vmul.f32 %v1465_v52, %v1465_v52  ;;  %v677_v32 = vsel %vm146_vm1, %v481_v9, 0.0  ;;  %v1725_v52 = vld [vmem:[%s2130_s0 + $0x300] sm:$0xff] }
  0xae   :  { %v674_v26 = vadd.f32 %v673_v12, %v672_v17  ;;  %v338_v3 = vsel %vm146_vm1, %v1725_v52, 0.0 }
  0xaf   :  { %v321_v35 = vadd.f32 %v320_v24, %v319_v30  ;;  %v483_v30 = vmul.f32 %v1475_v55, %v1475_v55  ;;  %v679_v36 = vsel %vm146_vm1, %v482_v21, 0.0  ;;  %v1735_v55 = vld [vmem:[%s2130_s0 + $0x308] sm:$0xff] }
  0xb0   :  { %v676_v2 = vadd.f32 %v675_v23, %v674_v26  ;;  %v340_v41 = vsel %vm146_vm1, %v1735_v55, 0.0 }
  0xb1   :  { %v323_v42 = vadd.f32 %v322_v33, %v321_v35  ;;  %v484_v35 = vmul.f32 %v1485_v58, %v1485_v58  ;;  %v681_v44 = vsel %vm146_vm1, %v483_v30, 0.0  ;;  %v1745_v58 = vld [vmem:[%s2130_s0 + $0x310] sm:$0xff] }
  0xb2   :  { %v678_v39 = vadd.f32 %v677_v32, %v676_v2  ;;  %v342_v48 = vsel %vm146_vm1, %v1745_v58, 0.0 }
  0xb3   :  { %v325_v50 = vadd.f32 %v324_v38, %v323_v42  ;;  %v485_v42 = vmul.f32 %v1495_v61, %v1495_v61  ;;  %v683_v51 = vsel %vm146_vm1, %v484_v35, 0.0  ;;  %v1755_v61 = vld [vmem:[%s2130_s0 + $0x318] sm:$0xff] }
  0xb4   :  { %v680_v45 = vadd.f32 %v679_v36, %v678_v39  ;;  %v344_v56 = vsel %vm146_vm1, %v1755_v61, 0.0 }
  0xb5   :  { %v327_v57 = vadd.f32 %v326_v10, %v325_v50  ;;  %v486_v50 = vmul.f32 %v1505_v0, %v1505_v0  ;;  %v685_v59 = vsel %vm146_vm1, %v485_v42, 0.0  ;;  %v1765_v0 = vld [vmem:[%s2130_s0 + $0x320] sm:$0xff] }
  0xb6   :  { %v682_v54 = vadd.f32 %v681_v44, %v680_v45  ;;  %v346_v63 = vsel %vm146_vm1, %v1765_v0, 0.0 }
  0xb7   :  { %v329_v4 = vadd.f32 %v328_v53, %v327_v57  ;;  %v487_v57 = vmul.f32 %v1515_v6, %v1515_v6  ;;  %v687_v5 = vsel %vm146_vm1, %v486_v50, 0.0  ;;  %v1775_v6 = vld [vmem:[%s2130_s0 + $0x328] sm:$0xff] }
  0xb8   :  { %v684_v62 = vadd.f32 %v683_v51, %v682_v54  ;;  %v348_v12 = vsel %vm146_vm1, %v1775_v6, 0.0 }
  0xb9   :  { %v331_v14 = vadd.f32 %v330_v60, %v329_v4  ;;  %v488_v4 = vmul.f32 %v1525_v11, %v1525_v11  ;;  %v689_v17 = vsel %vm146_vm1, %v487_v57, 0.0  ;;  %v1785_v11 = vld [vmem:[%s2130_s0 + $0x330] sm:$0xff] }
  0xba   :  { %v686_v9 = vadd.f32 %v685_v59, %v684_v62  ;;  %v350_v23 = vsel %vm146_vm1, %v1785_v11, 0.0 }
  0xbb   :  { %v333_v24 = vadd.f32 %v332_v8, %v331_v14  ;;  %v489_v14 = vmul.f32 %v1535_v15, %v1535_v15  ;;  %v691_v26 = vsel %vm146_vm1, %v488_v4, 0.0  ;;  %v1795_v15 = vld [vmem:[%s2130_s0 + $0x338] sm:$0xff] }
  0xbc   :  { %v688_v21 = vadd.f32 %v687_v5, %v686_v9  ;;  %v352_v32 = vsel %vm146_vm1, %v1795_v15, 0.0 }
  0xbd   :  { %v335_v33 = vadd.f32 %v334_v18, %v333_v24  ;;  %v490_v24 = vmul.f32 %v1545_v20, %v1545_v20  ;;  %v693_v2 = vsel %vm146_vm1, %v489_v14, 0.0  ;;  %v1805_v20 = vld [vmem:[%s2130_s0 + $0x340] sm:$0xff] }
  0xbe   :  { %v690_v30 = vadd.f32 %v689_v17, %v688_v21  ;;  %v354_v36 = vsel %vm146_vm1, %v1805_v20, 0.0 }
  0xbf   :  { %v337_v38 = vadd.f32 %v336_v27, %v335_v33  ;;  %v491_v33 = vmul.f32 %v1555_v29, %v1555_v29  ;;  %v695_v39 = vsel %vm146_vm1, %v490_v24, 0.0  ;;  %v1815_v29 = vld [vmem:[%s2130_s0 + $0x348] sm:$0xff] }
  0xc0   :  { %v692_v35 = vadd.f32 %v691_v26, %v690_v30  ;;  %v356_v44 = vsel %vm146_vm1, %v1815_v29, 0.0 }
  0xc1   :  { %v339_v10 = vadd.f32 %v338_v3, %v337_v38  ;;  %v492_v38 = vmul.f32 %v1565_v1, %v1565_v1  ;;  %v697_v45 = vsel %vm146_vm1, %v491_v33, 0.0  ;;  %v1825_v1 = vld [vmem:[%s2130_s0 + $0x350] sm:$0xff] }
  0xc2   :  { %v694_v42 = vadd.f32 %v693_v2, %v692_v35  ;;  %v358_v51 = vsel %vm146_vm1, %v1825_v1, 0.0 }
  0xc3   :  { %v341_v53 = vadd.f32 %v340_v41, %v339_v10  ;;  %v493_v10 = vmul.f32 %v1575_v7, %v1575_v7  ;;  %v699_v54 = vsel %vm146_vm1, %v492_v38, 0.0  ;;  %v1835_v7 = vld [vmem:[%s2130_s0 + $0x358] sm:$0xff] }
  0xc4   :  { %v696_v50 = vadd.f32 %v695_v39, %v694_v42  ;;  %v360_v59 = vsel %vm146_vm1, %v1835_v7, 0.0 }
  0xc5   :  { %v343_v60 = vadd.f32 %v342_v48, %v341_v53  ;;  %v494_v53 = vmul.f32 %v1585_v47, %v1585_v47  ;;  %v701_v62 = vsel %vm146_vm1, %v493_v10, 0.0  ;;  %v1845_v47 = vld [vmem:[%s2130_s0 + $0x360] sm:$0xff] }
  0xc6   :  { %v698_v57 = vadd.f32 %v697_v45, %v696_v50  ;;  %v362_v5 = vsel %vm146_vm1, %v1845_v47, 0.0 }
  0xc7   :  { %v345_v8 = vadd.f32 %v344_v56, %v343_v60  ;;  %v495_v60 = vmul.f32 %v1595_v13, %v1595_v13  ;;  %v703_v9 = vsel %vm146_vm1, %v494_v53, 0.0  ;;  %v1855_v13 = vld [vmem:[%s2130_s0 + $0x368] sm:$0xff] }
  0xc8   :  { %v700_v4 = vadd.f32 %v699_v54, %v698_v57  ;;  %v364_v17 = vsel %vm146_vm1, %v1855_v13, 0.0 }
  0xc9   :  { %v347_v18 = vadd.f32 %v346_v63, %v345_v8  ;;  %v496_v8 = vmul.f32 %v1605_v16, %v1605_v16  ;;  %v705_v21 = vsel %vm146_vm1, %v495_v60, 0.0  ;;  %v1865_v16 = vld [vmem:[%s2130_s0 + $0x370] sm:$0xff] }
  0xca   :  { %v702_v14 = vadd.f32 %v701_v62, %v700_v4  ;;  %v366_v26 = vsel %vm146_vm1, %v1865_v16, 0.0 }
  0xcb   :  { %v349_v27 = vadd.f32 %v348_v12, %v347_v18  ;;  %v497_v18 = vmul.f32 %v1615_v19, %v1615_v19  ;;  %v707_v30 = vsel %vm146_vm1, %v496_v8, 0.0  ;;  %v1875_v19 = vld [vmem:[%s2130_s0 + $0x378] sm:$0xff] }
  0xcc   :  { %v704_v24 = vadd.f32 %v703_v9, %v702_v14  ;;  %v368_v2 = vsel %vm146_vm1, %v1875_v19, 0.0 }
  0xcd   :  { %v351_v3 = vadd.f32 %v350_v23, %v349_v27  ;;  %v498_v27 = vmul.f32 %v1625_v22, %v1625_v22  ;;  %v709_v35 = vsel %vm146_vm1, %v497_v18, 0.0  ;;  %v1885_v22 = vld [vmem:[%s2130_s0 + $0x380] sm:$0xff] }
  0xce   :  { %v706_v33 = vadd.f32 %v705_v21, %v704_v24  ;;  %v370_v39 = vsel %vm146_vm1, %v1885_v22, 0.0 }
  0xcf   :  { %v353_v41 = vadd.f32 %v352_v32, %v351_v3  ;;  %v499_v3 = vmul.f32 %v1635_v25, %v1635_v25  ;;  %v711_v42 = vsel %vm146_vm1, %v498_v27, 0.0  ;;  %v1895_v25 = vld [vmem:[%s2130_s0 + $0x388] sm:$0xff] }
  0xd0   :  { %v708_v38 = vadd.f32 %v707_v30, %v706_v33  ;;  %v372_v45 = vsel %vm146_vm1, %v1895_v25, 0.0 }
  0xd1   :  { %v355_v48 = vadd.f32 %v354_v36, %v353_v41  ;;  %v500_v41 = vmul.f32 %v1645_v28, %v1645_v28  ;;  %v713_v50 = vsel %vm146_vm1, %v499_v3, 0.0  ;;  %v1905_v28 = vld [vmem:[%s2130_s0 + $0x390] sm:$0xff] }
  0xd2   :  { %v710_v10 = vadd.f32 %v709_v35, %v708_v38  ;;  %v374_v54 = vsel %vm146_vm1, %v1905_v28, 0.0 }
  0xd3   :  { %v357_v56 = vadd.f32 %v356_v44, %v355_v48  ;;  %v501_v48 = vmul.f32 %v1655_v31, %v1655_v31  ;;  %v715_v57 = vsel %vm146_vm1, %v500_v41, 0.0  ;;  %v1915_v31 = vld [vmem:[%s2130_s0 + $0x398] sm:$0xff] }
  0xd4   :  { %v712_v53 = vadd.f32 %v711_v42, %v710_v10  ;;  %v376_v62 = vsel %vm146_vm1, %v1915_v31, 0.0 }
  0xd5   :  { %v359_v63 = vadd.f32 %v358_v51, %v357_v56  ;;  %v502_v56 = vmul.f32 %v1665_v34, %v1665_v34  ;;  %v717_v4 = vsel %vm146_vm1, %v501_v48, 0.0  ;;  %v1925_v34 = vld [vmem:[%s2130_s0 + $0x3a0] sm:$0xff] }
  0xd6   :  { %v714_v60 = vadd.f32 %v713_v50, %v712_v53  ;;  %v378_v9 = vsel %vm146_vm1, %v1925_v34, 0.0 }
  0xd7   :  { %v361_v12 = vadd.f32 %v360_v59, %v359_v63  ;;  %v503_v63 = vmul.f32 %v1675_v37, %v1675_v37  ;;  %v719_v14 = vsel %vm146_vm1, %v502_v56, 0.0  ;;  %v1935_v37 = vld [vmem:[%s2130_s0 + $0x3a8] sm:$0xff] }
  0xd8   :  { %v716_v8 = vadd.f32 %v715_v57, %v714_v60  ;;  %v380_v21 = vsel %vm146_vm1, %v1935_v37, 0.0 }
  0xd9   :  { %v363_v23 = vadd.f32 %v362_v5, %v361_v12  ;;  %v504_v12 = vmul.f32 %v1685_v40, %v1685_v40  ;;  %v721_v24 = vsel %vm146_vm1, %v503_v63, 0.0  ;;  %v1945_v40 = vld [vmem:[%s2130_s0 + $0x3b0] sm:$0xff] }
  0xda   :  { %v718_v18 = vadd.f32 %v717_v4, %v716_v8  ;;  %v382_v30 = vsel %vm146_vm1, %v1945_v40, 0.0 }
  0xdb   :  { %v365_v32 = vadd.f32 %v364_v17, %v363_v23  ;;  %v505_v23 = vmul.f32 %v1695_v43, %v1695_v43  ;;  %v723_v33 = vsel %vm146_vm1, %v504_v12, 0.0  ;;  %v1955_v43 = vld [vmem:[%s2130_s0 + $0x3b8] sm:$0xff] }
  0xdc   :  { %v720_v27 = vadd.f32 %v719_v14, %v718_v18  ;;  %v384_v35 = vsel %vm146_vm1, %v1955_v43, 0.0 }
  0xdd   :  { %v367_v36 = vadd.f32 %v366_v26, %v365_v32  ;;  %v506_v32 = vmul.f32 %v1705_v46, %v1705_v46  ;;  %v725_v38 = vsel %vm146_vm1, %v505_v23, 0.0  ;;  %v1965_v46 = vld [vmem:[%s2130_s0 + $0x3c0] sm:$0xff] }
  0xde   :  { %v722_v3 = vadd.f32 %v721_v24, %v720_v27  ;;  %v386_v42 = vsel %vm146_vm1, %v1965_v46, 0.0 }
  0xdf   :  { %v369_v44 = vadd.f32 %v368_v2, %v367_v36  ;;  %v507_v36 = vmul.f32 %v1715_v49, %v1715_v49  ;;  %v727_v10 = vsel %vm146_vm1, %v506_v32, 0.0  ;;  %v1975_v49 = vld [vmem:[%s2130_s0 + $0x3c8] sm:$0xff] }
  0xe0   :  { %v724_v41 = vadd.f32 %v723_v33, %v722_v3  ;;  %v388_v50 = vsel %vm146_vm1, %v1975_v49, 0.0 }
  0xe1   :  { %v371_v51 = vadd.f32 %v370_v39, %v369_v44  ;;  %v508_v44 = vmul.f32 %v1725_v52, %v1725_v52  ;;  %v729_v53 = vsel %vm146_vm1, %v507_v36, 0.0  ;;  %v1985_v52 = vld [vmem:[%s2130_s0 + $0x3d0] sm:$0xff] }
  0xe2   :  { %v726_v48 = vadd.f32 %v725_v38, %v724_v41  ;;  %v390_v57 = vsel %vm146_vm1, %v1985_v52, 0.0 }
  0xe3   :  { %v373_v59 = vadd.f32 %v372_v45, %v371_v51  ;;  %v509_v51 = vmul.f32 %v1735_v55, %v1735_v55  ;;  %v731_v60 = vsel %vm146_vm1, %v508_v44, 0.0  ;;  %v1995_v55 = vld [vmem:[%s2130_s0 + $0x3d8] sm:$0xff] }
  0xe4   :  { %v728_v56 = vadd.f32 %v727_v10, %v726_v48  ;;  %v392_v4 = vsel %vm146_vm1, %v1995_v55, 0.0 }
  0xe5   :  { %v375_v5 = vadd.f32 %v374_v54, %v373_v59  ;;  %v510_v59 = vmul.f32 %v1745_v58, %v1745_v58  ;;  %v733_v8 = vsel %vm146_vm1, %v509_v51, 0.0  ;;  %v2005_v58 = vld [vmem:[%s2130_s0 + $0x3e0] sm:$0xff] }
  0xe6   :  { %v730_v63 = vadd.f32 %v729_v53, %v728_v56  ;;  %v394_v14 = vsel %vm146_vm1, %v2005_v58, 0.0 }
  0xe7   :  { %v377_v17 = vadd.f32 %v376_v62, %v375_v5  ;;  %v511_v5 = vmul.f32 %v1755_v61, %v1755_v61  ;;  %v735_v18 = vsel %vm146_vm1, %v510_v59, 0.0  ;;  %v2015_v61 = vld [vmem:[%s2130_s0 + $0x3e8] sm:$0xff] }
  0xe8   :  { %v732_v12 = vadd.f32 %v731_v60, %v730_v63  ;;  %v396_v24 = vsel %vm146_vm1, %v2015_v61, 0.0 }
  0xe9   :  { %v379_v26 = vadd.f32 %v378_v9, %v377_v17  ;;  %v512_v17 = vmul.f32 %v1765_v0, %v1765_v0  ;;  %v737_v27 = vsel %vm146_vm1, %v511_v5, 0.0  ;;  %v2025_v0 = vld [vmem:[%s2130_s0 + $0x3f0] sm:$0xff] }
  0xea   :  { %v734_v23 = vadd.f32 %v733_v8, %v732_v12  ;;  %v398_v33 = vsel %vm146_vm1, %v2025_v0, 0.0 }
  0xeb   :  { %v381_v2 = vadd.f32 %v380_v21, %v379_v26  ;;  %v513_v26 = vmul.f32 %v1775_v6, %v1775_v6  ;;  %v739_v3 = vsel %vm146_vm1, %v512_v17, 0.0  ;;  %v2035_v6 = vld [vmem:[%s2130_s0 + $0x3f8] sm:$0xff]  ;;  %v522_v17 = vmul.f32 %v1865_v16, %v1865_v16 }
  0xec   :  { %v736_v32 = vadd.f32 %v735_v18, %v734_v23  ;;  %v400_v38 = vsel %vm146_vm1, %v2035_v6, 0.0  ;;  %v523_v23 = vmul.f32 %v1875_v19, %v1875_v19 }
  0xed   :  { %v383_v39 = vadd.f32 %v382_v30, %v381_v2  ;;  %v514_v2 = vmul.f32 %v1785_v11, %v1785_v11  ;;  %v741_v41 = vsel %vm146_vm1, %v513_v26, 0.0  ;;  %v516_v11 = vmul.f32 %v1805_v20, %v1805_v20 }
  0xee   :  { %v738_v36 = vadd.f32 %v737_v27, %v736_v32  ;;  %v519_v20 = vmul.f32 %v1835_v7, %v1835_v7  ;;  %v145_v7 = vld [vmem:[%s2131_s1] sm:$0x1]  ;;  %v524_v27 = vmul.f32 %v1885_v22, %v1885_v22  ;;  %v525_v32 = vmul.f32 %v1895_v25, %v1895_v25 }
  0xef   :  { %v385_v45 = vadd.f32 %v384_v35, %v383_v39  ;;  %v515_v39 = vmul.f32 %v1795_v15, %v1795_v15  ;;  %v743_v10 = vsel %vm146_vm1, %v514_v2, 0.0  ;;  %v518_v15 = vmul.f32 %v1825_v1, %v1825_v1 }
  0xf0   :  { %v740_v44 = vadd.f32 %v739_v3, %v738_v36  ;;  %v747_v56 = vsel %vm146_vm1, %v516_v11, 0.0  ;;  %v521_v1 = vmul.f32 %v1855_v13, %v1855_v13  ;;  %v761_v19 = vsel %vm146_vm1, %v523_v23, 0.0 }
  0xf1   :  { %v387_v54 = vadd.f32 %v386_v42, %v385_v45  ;;  %v745_v51 = vsel %vm146_vm1, %v515_v39, 0.0  ;;  %v526_v2 = vmul.f32 %v1905_v28, %v1905_v28  ;;  %v763_v3 = vsel %vm146_vm1, %v524_v27, 0.0 }
  0xf2   :  { %v742_v48 = vadd.f32 %v741_v41, %v740_v44  ;;  %v757_v13 = vsel %vm146_vm1, %v521_v1, 0.0  ;;  %v765_v36 = vsel %vm146_vm1, %v525_v32, 0.0  ;;  %v528_v39 = vmul.f32 %v1925_v34, %v1925_v34 }
  0xf3   :  { %v389_v62 = vadd.f32 %v388_v50, %v387_v54  ;;  %v517_v50 = vmul.f32 %v1815_v29, %v1815_v29  ;;  %v520_v29 = vmul.f32 %v1845_v47, %v1845_v47  ;;  %v767_v25 = vsel %vm146_vm1, %v526_v2, 0.0 }
  0xf4   :  { %v744_v54 = vadd.f32 %v743_v10, %v742_v48  ;;  %v530_v11 = vmul.f32 %v1945_v40, %v1945_v40 }
  0xf5   :  { %v391_v9 = vadd.f32 %v390_v57, %v389_v62  ;;  %v749_v60 = vsel %vm146_vm1, %v517_v50, 0.0  ;;  %v755_v47 = vsel %vm146_vm1, %v520_v29, 0.0  ;;  %v532_v50 = vmul.f32 %v1965_v46, %v1965_v46 }
  0xf6   :  { %v746_v59 = vadd.f32 %v745_v51, %v744_v54  ;;  %v538_v29 = vmul.f32 %v2025_v0, %v2025_v0 }
  0xf7   :  { %v393_v21 = vadd.f32 %v392_v4, %v391_v9  ;;  %v751_v4 = vsel %vm146_vm1, %v518_v15, 0.0  ;;  %v753_v9 = vsel %vm146_vm1, %v519_v20, 0.0  ;;  %v534_v15 = vmul.f32 %v1985_v52, %v1985_v52 }
  0xf8   :  { %v748_v63 = vadd.f32 %v747_v56, %v746_v59  ;;  %v536_v20 = vmul.f32 %v2005_v58, %v2005_v58  ;;  %v791_v1 = vsel %vm146_vm1, %v538_v29, 0.0 }
  0xf9   :  { %v395_v30 = vadd.f32 %v394_v14, %v393_v21 }
  0xfa   :  { %v750_v8 = vadd.f32 %v749_v60, %v748_v63 }
  0xfb   :  { %v397_v35 = vadd.f32 %v396_v24, %v395_v30  ;;  %v759_v30 = vsel %vm146_vm1, %v522_v17, 0.0 }
  0xfc   :  { %v752_v14 = vadd.f32 %v751_v4, %v750_v8 }
  0xfd   :  { %v399_v42 = vadd.f32 %v398_v33, %v397_v35  ;;  %v527_v35 = vmul.f32 %v1915_v31, %v1915_v31  ;;  %v771_v31 = vsel %vm146_vm1, %v528_v39, 0.0 }
  0xfe   :  { %v754_v21 = vadd.f32 %v753_v9, %v752_v14 }
  0xff   :  { %v401_v45 = vadd.f32 %v400_v38, %v399_v42  ;;  %v529_v42 = vmul.f32 %v1935_v37, %v1935_v37  ;;  %v769_v28 = vsel %vm146_vm1, %v527_v35, 0.0  ;;  %v775_v37 = vsel %vm146_vm1, %v530_v11, 0.0 }
 0x100   :  { %v756_v26 = vadd.f32 %v755_v47, %v754_v21  ;;  %v411_v21 = vld [vmem:[%s2132_s2] sm:$0x1] }
 0x101   :  { %v402_v53 = vrot.slane %v401_v45, 4  ;;  %v773_v34 = vsel %vm146_vm1, %v529_v42, 0.0 }
 0x102   :  { %v758_v16 = vadd.f32 %v757_v13, %v756_v26 }
 0x103   :  { %v403_v57 = vadd.f32 %v402_v53, %v401_v45  ;;  %v531_v45 = vmul.f32 %v1955_v43, %v1955_v43  ;;  %v533_v53 = vmul.f32 %v1975_v49, %v1975_v49  ;;  %v779_v43 = vsel %vm146_vm1, %v532_v50, 0.0 }
 0x104   :  { %v760_v33 = vadd.f32 %v759_v30, %v758_v16  ;;  %v783_v49 = vsel %vm146_vm1, %v534_v15, 0.0 }
 0x105   :  { %v404_v62 = vrot.slane %v403_v57, 2  ;;  %v777_v40 = vsel %vm146_vm1, %v531_v45, 0.0  ;;  %v781_v46 = vsel %vm146_vm1, %v533_v53, 0.0 }
 0x106   :  { %v762_v22 = vadd.f32 %v761_v19, %v760_v33 }
 0x107   :  { %v405_v5 = vadd.f32 %v404_v62, %v403_v57  ;;  %v535_v57 = vmul.f32 %v1995_v55, %v1995_v55  ;;  %v537_v62 = vmul.f32 %v2015_v61, %v2015_v61  ;;  %v787_v55 = vsel %vm146_vm1, %v536_v20, 0.0 }
 0x108   :  { %v764_v38 = vadd.f32 %v763_v3, %v762_v22 }
 0x109   :  { %v406_v12 = vrot.slane %v405_v5, 1  ;;  %v785_v52 = vsel %vm146_vm1, %v535_v57, 0.0  ;;  %v789_v58 = vsel %vm146_vm1, %v537_v62, 0.0 }
 0x10a   :  { %v766_v41 = vadd.f32 %v765_v36, %v764_v38 }
 0x10b   :  { %v407_v18 = vadd.f32 %v406_v12, %v405_v5  ;;  %v539_v5 = vmul.f32 %v2035_v6, %v2035_v6 }
 0x10c   :  { %v768_v44 = vadd.f32 %v767_v25, %v766_v41 }
 0x10d   :  { %v408_v24 = vadd.f32 %v407_v18, %v145_v7  ;;  %v793_v61 = vsel %vm146_vm1, %v539_v5, 0.0 }
 0x10e   :  { %v770_v10 = vadd.f32 %v769_v28, %v768_v44 }
 0x10f   :  { %410 = vst.msk [vmem:[%s2131_s1] sm:$0x1] %vm14_vm0, %v408_v24 }
 0x110   :  { %v772_v48 = vadd.f32 %v771_v31, %v770_v10 }
 0x112   :  { %v774_v51 = vadd.f32 %v773_v34, %v772_v48 }
 0x114   :  { %v776_v54 = vadd.f32 %v775_v37, %v774_v51 }
 0x116   :  { %v778_v56 = vadd.f32 %v777_v40, %v776_v54 }
 0x118   :  { %v780_v59 = vadd.f32 %v779_v43, %v778_v56 }
 0x11a   :  { %v782_v60 = vadd.f32 %v781_v46, %v780_v59 }
 0x11c   :  { %v784_v63 = vadd.f32 %v783_v49, %v782_v60 }
 0x11e   :  { %v786_v4 = vadd.f32 %v785_v52, %v784_v63 }
 0x120   :  { %v788_v8 = vadd.f32 %v787_v55, %v786_v4 }
 0x122   :  { %v790_v9 = vadd.f32 %v789_v58, %v788_v8 }
 0x124   :  { %v792_v12 = vadd.f32 %v791_v1, %v790_v9 }
 0x126   :  { %v794_v14 = vadd.f32 %v793_v61, %v792_v12 }
 0x128   :  { %v795_v7 = vrot.slane %v794_v14, 4 }
 0x12a   :  { %v796_v17 = vadd.f32 %v795_v7, %v794_v14 }
 0x12c   :  { %v797_v47 = vrot.slane %v796_v17, 2 }
 0x12e   :  { %v798_v0 = vadd.f32 %v797_v47, %v796_v17 }
 0x130   :  { %v799_v18 = vrot.slane %v798_v0, 1 }
 0x132   :  { %v800_v6 = vadd.f32 %v799_v18, %v798_v0 }
 0x134   :  { %v801_v23 = vadd.f32 %v800_v6, %v411_v21 }
 0x136   :  { %802 = vst.msk [vmem:[%s2132_s2] sm:$0x1] %vm14_vm0, %v801_v23 }

// kernel: conv3d_block_forward.3
= control target key start
LH: loop header
LB: loop body
LE: loop exit
PB: predicated region body
PF: predicated region fallthrough
CT: control target
= control target key end

     0   :  { %s1777_s18 = smov 0   ;;  %s1779_s19 = smov 0   ;;  %s2123_s0 = inlined_call_operand.vmem [shape: f32[2,8,72,8], index: 0, kind: input, shape index: {}]   ;;  %s2124_s1 = inlined_call_operand.vmem [shape: bf16[27,8,128], index: 1, kind: input, shape index: {}]   ;;  %s2125_s2 = inlined_call_operand.vmem [shape: f32[1,8], index: 2, kind: input, shape index: {}]   ;;  %s2126_s3 = inlined_call_operand.vmem [shape: f32[1,8], index: 3, kind: input, shape index: {}]   ;;  %s2127_s4 = inlined_call_operand.vmem [shape: f32[1,128], index: 4, kind: input, shape index: {}]   ;;  %s2128_s5 = inlined_call_operand.vmem [shape: f32[2,6,48,128], index: 5, kind: output, shape index: {}]  }
   0x1   :  { %s1781_s20 = smov 0   ;;  %s1783_s21 = smov 0  }
   0x2   :  { %s1785_s22 = smov 0   ;;  %s1787_s23 = smov 0  }
   0x3   :  { %s1789_s24 = smov 0  }
   0x4 LB: > { %s27_s25 = sadd.s32 1, %s1731_s21  ;;  %s30_s26 = sadd.s32 1, %s1735_s22  ;;  %s1743_s24 = sphi %s1789_s24, %s15_s24   ;;  %s1739_s23 = sphi %s1787_s23, %s2134_s23   ;;  %s1735_s22 = sphi %s1785_s22, %s2133_s22   ;;  %s1731_s21 = sphi %s1783_s21, %s2132_s21   ;;  %s1727_s20 = sphi %s1781_s20, %s2131_s20   ;;  %s1723_s19 = sphi %s1779_s19, %s2130_s19   ;;  %s1719_s18 = sphi %s1777_s18, %s2129_s18  }
   0x5   : > { %p28_p0 = scmp.ge.s32.totalorder %s27_s25, 3  ;;  %p1317_p1 = scmp.ge.s32.totalorder %s1743_s24, 1 }
   0x6   : > { %p218_p2 = scmp.lt.s32.totalorder %s1743_s24, 37  ;;  %s34_s27 = sadd.s32 1, %s1739_s23 }
   0x7   : > { %s2136_s25 = smov (%p28_p0, %s27_s25), 0  ;;  %s2138_s26 = smov (!%p28_p0, %s30_s26), %s1735_s22 }
   0x8   : > { %p219_p3 = pnand %p1317_p1, %p218_p2  ;;  %p32_p4 = scmp.ge.s32.totalorder %s2138_s26, 6 }
   0x9   : > { %s1372_s28 = smul.u32 (!%p219_p3), 36, %s1719_s18  ;;  %s255_s29 = sadd.s32 (!%p219_p3), %s1719_s18, %s1723_s19  ;;  %v1745_v0 = vmov (!%p219_p3), 0.0   ;;  %vm377_vm0 = vcmask (!%p219_p3), 1043456   ;;  %vm1746_vm1 = vmmov (!%p219_p3), 0   ;;  %v1320_v8 = vld [vmem:[%s2125_s2] ss:$0 sm:$0xff] (!%p219_p3) }
   0xa   : > { %s2140_s26 = smov (%p32_p4, %s2138_s26), 0  ;;  %s2142_s27 = smov (!%p32_p4, %s34_s27), %s1739_s23 }
   0xb   : > { %p36_p5 = scmp.ge.s32.totalorder %s2142_s27, 2  ;;  %222 = sbr.rel (%p219_p3) target bundleno = 382 (0x17e), region = 40  ;;  %1409 = vmatprep.subr.bf16.mxu1 (!%p219_p3), %v1745_v0  ;;  %1465 = vmatprep.subr.bf16.mxu0 (!%p219_p3), %v1745_v0  ;;  %v1869_v10 = vld [vmem:[%s2126_s3] ss:$0 sm:$0xff] (!%p219_p3)  ;;  %vm338_vm2 = vsmask.f32 (!%p219_p3), 7424 }
   0xc   : > { %p256_p6 = scmp.lt.s32.totalorder (!%p219_p3), %s1727_s20, 1  ;;  %p258_p7 = scmp.lt.s32.totalorder (!%p219_p3), %s255_s29, 7  ;;  %1411 = vmatprep.mubr.msk.bf16.mxu1 (!%p219_p3), %vm1746_vm1, %v1745_v0  ;;  %1467 = vmatprep.mubr.msk.bf16.mxu0 (!%p219_p3), %vm1746_vm1, %v1745_v0  ;;  %vm367_vm3 = vcmask (!%p219_p3), 64512   ;;  %vm512_vm4 = vcmask (!%p219_p3), 1046528  }
   0xd   : > { %s2144_s27 = smov (%p36_p5, %s2142_s27), 0  ;;  %s1834_s7 = scalar_lea.vmem (!%p219_p3), %s2124_s1, %s1372_s28 }
   0xe   : > { %p268_p8 = scmp.lt.s32.totalorder (!%p219_p3), %s1723_s19, 5  ;;  %v1324_v1 = vld [vmem:[%s1834_s7 + $0x4] sm:$0xf] (!%p219_p3)  ;;  %v1342_v2 = vld [vmem:[%s1834_s7 + $0x10] sm:$0xf] (!%p219_p3)  ;;  %p1366_p9 = scmp.ne.s32.totalorder (!%p219_p3), %s1719_s18, 0 }
   0xf   : > { %v379_v3 = vsel (!%p219_p3), %vm377_vm0, %v1324_v1, 0  ;;  %v1846_v4 = vsel (!%p219_p3), %vm377_vm0, %v1342_v2, 0  ;;  %v1337_v5 = vld [vmem:[%s1834_s7 + $0xc] sm:$0xf] (!%p219_p3)  ;;  %v1362_v7 = vld [vmem:[%s1834_s7 + $0x20] sm:$0xf] (!%p219_p3) }
  0x10   : > { %1410 = vmatpush3.bf16.msra.mxu1 (!%p219_p3), %v379_v3  ;;  %1466 = vmatpush3.bf16.msra.mxu0 (!%p219_p3), %v1846_v4  ;;  %v1854_v6 = vsel (!%p219_p3), %vm377_vm0, %v1337_v5, 0  ;;  %v1861_v9 = vsel (!%p219_p3), %vm377_vm0, %v1362_v7, 0  ;;  %v332_v54 = vld [vmem:[%s1834_s7] sm:$0xf] (!%p219_p3)  ;;  %v1347_v56 = vld [vmem:[%s1834_s7 + $0x14] sm:$0xf] (!%p219_p3) }
  0x11   : > { %1423 = vmatprep.subr.bf16.mxu1 (!%p219_p3), %v1745_v0  ;;  %1479 = vmatprep.subr.bf16.mxu0 (!%p219_p3), %v1745_v0  ;;  %v445_v2 = vsel (!%p219_p3), %vm377_vm0, %v332_v54, 0  ;;  %v807_v3 = vsel (!%p219_p3), %vm377_vm0, %v1347_v56, 0 }
  0x12   : > { %s2146_s20 = smov (!%p256_p6, %s1727_s20), 1  ;;  %s2148_s29 = smov (!%p258_p7, %s255_s29), 7 }
  0x13   : > { %s1628_s8 = smul.u32 72, %s2146_s20  ;;  %s2150_s19 = smov (!%p268_p8, %s1723_s19), 5 }
  0x14   : > { %s1627_s9 = smul.u32 9, %s2148_s29 }
  0x15   : > { %s1630_s11 = smul.u32 36, %s2146_s20 }
  0x16   : > { %s262_s10 = sadd.s32 %s1628_s8, %s1627_s9  ;;  %s1629_s13 = smul.u32 6, %s2150_s19 }
  0x17   : > { %s1318_s12 = sshll.u32 %s262_s10, 3 }
  0x18   : > { %s264_s28 = scalar_lea.vmem %s2123_s0, %s1318_s12  ;;  %s272_s20 = sadd.s32 %s1630_s11, %s1629_s13 }
  0x19   : > { %v276_v11 = vld [vmem:[%s264_s28] sm:$0xff]  ;;  %v277_v12 = vld [vmem:[%s264_s28 + $0x8] sm:$0xff]  ;;  %v278_v13 = vld [vmem:[%s264_s28 + $0x10] sm:$0xff]  ;;  %s1319_s19 = sshll.u32 %s272_s20, 3 }
  0x1a   : > { %v279_v14 = vld [vmem:[%s264_s28 + $0x18] sm:$0xff]  ;;  %v292_v15 = vmul.f32 %v1320_v8, %v276_v11  ;;  %v293_v16 = vmul.f32 %v1320_v8, %v277_v12  ;;  %v294_v17 = vmul.f32 %v1320_v8, %v278_v13  ;;  %v280_v18 = vld [vmem:[%s264_s28 + $0x20] sm:$0xff]  ;;  %v281_v19 = vld [vmem:[%s264_s28 + $0x28] sm:$0xff]  ;;  %s1874_s9 = scalar_lea.vmem %s2128_s5, %s1319_s19 }
  0x1b   : > { %v295_v20 = vmul.f32 %v1320_v8, %v279_v14  ;;  %v296_v21 = vmul.f32 %v1320_v8, %v280_v18  ;;  %v297_v22 = vmul.f32 %v1320_v8, %v281_v19  ;;  %v282_v23 = vld [vmem:[%s264_s28 + $0x30] sm:$0xff]  ;;  %v283_v31 = vld [vmem:[%s264_s28 + $0x38] sm:$0xff]  ;;  %v284_v32 = vld [vmem:[%s264_s28 + $0x40] sm:$0xff] }
  0x1c   : > { %v308_v24 = vadd.f32 %v1869_v10, %v292_v15  ;;  %v309_v25 = vadd.f32 %v1869_v10, %v293_v16  ;;  %v310_v26 = vadd.f32 %v1869_v10, %v294_v17  ;;  %v298_v30 = vmul.f32 %v1320_v8, %v282_v23 }
  0x1d   : > { %v311_v27 = vadd.f32 %v1869_v10, %v295_v20  ;;  %v312_v28 = vadd.f32 %v1869_v10, %v296_v21  ;;  %v313_v29 = vadd.f32 %v1869_v10, %v297_v22  ;;  %v299_v41 = vmul.f32 %v1320_v8, %v283_v31 }
  0x1e   : > { %v317_v33 = vmax.f32 %v308_v24, 0.0  ;;  %v318_v34 = vmax.f32 %v309_v25, 0.0  ;;  %v319_v35 = vmax.f32 %v310_v26, 0.0  ;;  %v300_v42 = vmul.f32 %v1320_v8, %v284_v32 }
  0x1f   : > { %v320_v36 = vmax.f32 %v311_v27, 0.0  ;;  %v321_v37 = vmax.f32 %v312_v28, 0.0  ;;  %v322_v38 = vmax.f32 %v313_v29, 0.0  ;;  %v314_v46 = vadd.f32 %v1869_v10, %v298_v30 }
  0x20   : > { %v1882_v39 = vpack.c.bf16 %v318_v34, %v317_v33  ;;  %v1884_v40 = vpack.c.bf16 %v319_v35, %v318_v34  ;;  %v315_v57 = vadd.f32 %v1869_v10, %v299_v41  ;;  %v316_v17 = vadd.f32 %v1869_v10, %v300_v42  ;;  %v1352_v33 = vld [vmem:[%s1834_s7 + $0x18] sm:$0xf] }
  0x21   : > { %v1886_v43 = vpack.c.bf16 %v320_v36, %v319_v35  ;;  %v1888_v44 = vpack.c.bf16 %v322_v38, %v321_v37  ;;  %v1890_v45 = vpack.c.bf16 %v321_v37, %v320_v36  ;;  %v323_v60 = vmax.f32 %v314_v46, 0.0 }
  0x22   : > { %v340_v47 = vshrl.u32 %v1882_v39, 16  ;;  %v342_v48 = vshll.u32 %v1882_v39, 16  ;;  %v682_v49 = vshrl.u32 %v1884_v40, 16  ;;  %v684_v50 = vshll.u32 %v1884_v40, 16 }
  0x23   : > { %v347_v51 = vshll.u32 %v1886_v43, 16  ;;  %v688_v52 = vshll.u32 %v1890_v45, 16  ;;  %v351_v63 = vshrl.u32 %v1886_v43, 16  ;;  %v355_v1 = vshll.u32 %v1888_v44, 16 }
  0x24   : > { %v344_v53 = vrot.slane %v342_v48, 1  ;;  %v686_v55 = vrot.slane %v684_v50, 1  ;;  %v324_v8 = vmax.f32 %v315_v57, 0.0  ;;  %v692_v11 = vshrl.u32 %v1890_v45, 16  ;;  %v1332_v57 = vld [vmem:[%s1834_s7 + $0x8] sm:$0xf] }
  0x25   : > { %v349_v58 = vrot.slane %v347_v51, 1  ;;  %v690_v59 = vrot.slane %v688_v52, 1  ;;  %v357_v13 = vrot.slane %v355_v1, 1  ;;  %v1911_v14 = vpack.c.bf16 %v323_v60, %v323_v60 }
  0x26   : > { %v345_v61 = vor.u32 %v344_v53, %v340_v47  ;;  %v687_v62 = vor.u32 %v686_v55, %v682_v49  ;;  %v1913_v15 = vpack.c.bf16 %v324_v8, %v323_v60  ;;  %v790_v16 = vrot.slane %v1884_v40, 1 }
  0x27   : > { %v353_v12 = vor.u32 %v351_v63, %v349_v58  ;;  %v791_v18 = vrot.slane %v1890_v45, 1  ;;  %v359_v19 = vshrl.u32 %v1888_v44, 16  ;;  %v1924_v20 = vpack.c.bf16 %v323_v60, %v322_v38 }
  0x28   : > { %v350_v5 = vsel %vm338_vm2, %v345_v61, %v349_v58  ;;  %v691_v7 = vsel %vm338_vm2, %v687_v62, %v690_v59  ;;  %v951_v21 = vshll.u32 %v1913_v15, 16  ;;  %v694_v22 = vor.u32 %v692_v11, %v690_v59  ;;  %v1357_v61 = vld [vmem:[%s1834_s7 + $0x1c] sm:$0xf] }
  0x29   : > { %1412 = vmatmul.mubr.msk.bf16.vlgmr.msra.gmra.mrb[0].mxu1 %vm367_vm3, %v350_v5  ;;  %1468 = vmatmul.mubr.msk.bf16.vlgmr.msra.gmra.mrb[0].mxu0 %vm367_vm3, %v691_v7  ;;  %v677_v23 = vpack.c.bf16 %v324_v8, %v324_v8  ;;  %v325_v24 = vmax.f32 %v316_v17, 0.0  ;;  %v955_v25 = vshrl.u32 %v1913_v15, 16  ;;  %v1930_v10 = vsel %vm338_vm2, %v353_v12, %v357_v13 }
  0x2a   : > { %1424 = vmatpush3.bf16.msra.mxu1 %v445_v2  ;;  %1480 = vmatpush3.bf16.msra.mxu0 %v807_v3  ;;  %v363_v26 = vshll.u32 %v1911_v14, 16  ;;  %v695_v27 = vshll.u32 %v1924_v20, 16  ;;  %v699_v28 = vshrl.u32 %v1924_v20, 16  ;;  %v1935_v29 = vrot.slane %v951_v21, 1 }
  0x2b   : > { %1415 = vmatprep.mubr.msk.bf16.mxu1 %vm1746_vm1, %v1745_v0  ;;  %1481 = vmatprep.mubr.msk.bf16.mxu0 %vm1746_vm1, %v1745_v0  ;;  %v946_v30 = vpack.c.bf16 %v325_v24, %v325_v24  ;;  %v703_v31 = vshll.u32 %v677_v23, 16  ;;  %v792_v32 = vsel %vm512_vm4, %v790_v16, %v791_v18  ;;  %v1041_v34 = vrot.slane %v1913_v15, 1 }
  0x2c   : > { %1493 = vmatprep.subr.bf16.mxu0 %v1745_v0  ;;  %1437 = vmatprep.subr.bf16.mxu1 %v1745_v0  ;;  %v697_v35 = vrot.slane %v695_v27, 1  ;;  %v957_v36 = vor.u32 %v955_v25, %v1935_v29  ;;  %v361_v42 = vor.u32 %v359_v19, %v357_v13  ;;  %v365_v46 = vrot.slane %v363_v26, 1 }
  0x2d   : > { %v959_v37 = vshll.u32 %v946_v30, 16  ;;  %v1043_v38 = vrot.slane %v946_v30, 1  ;;  %v705_v41 = vrot.slane %v703_v31, 1  ;;  %v881_v49 = vsel %vm377_vm0, %v1352_v33, 0 }
  0x2e   : > { %v1946_v47 = vsel %vm338_vm2, %v694_v22, %v697_v35  ;;  %v701_v48 = vor.u32 %v699_v28, %v697_v35  ;;  %v366_v54 = vsel %vm338_vm2, %v361_v42, %v365_v46  ;;  %v793_v55 = vrot.slane %v1924_v20, 1 }
  0x2f   : > { %v961_v50 = vrot.slane %v959_v37, 1  ;;  %v1952_v51 = vsel %vm512_vm4, %v1041_v34, %v1043_v38  ;;  %v795_v58 = vrot.slane %v677_v23, 1  ;;  %v530_v59 = vsel %vm377_vm0, %v1332_v57, 0 }
  0x30   : > { %v1955_v52 = vsel %vm338_vm2, %v701_v48, %v705_v41  ;;  %v794_v56 = vsel %vm512_vm4, %v791_v18, %v793_v55  ;;  %v970_v62 = vsel %vm377_vm0, %v1357_v61, 0  ;;  %v513_v63 = vrot.slane %v1882_v39, 1 }
  0x31   : > { %1416 = vmatmul.mubr.msk.bf16.gmra.mrb[4].mxu1 %vm367_vm3, %v1930_v10  ;;  %v962_v53 = vsel %vm338_vm2, %v957_v36, %v961_v50  ;;  %v796_v60 = vsel %vm512_vm4, %v793_v55, %v795_v58  ;;  %v514_v1 = vrot.slane %v1886_v43, 1  ;;  %v516_v3 = vrot.slane %v1888_v44, 1 }
  0x32   : > { %1419 = vmatprep.mubr.msk.bf16.mxu1 %vm1746_vm1, %v1745_v0 }
  0x33   : > { %v515_v2 = vsel %vm512_vm4, %v513_v63, %v514_v1 }
  0x35   : > { %1482 = vmatmul.mubr.msk.bf16.vlgmr.msra.gmra.mrb[0].mxu0 %vm367_vm3, %v792_v32 }
  0x36   : > { %1494 = vmatpush3.bf16.msra.mxu0 %v881_v49  ;;  %1485 = vmatprep.mubr.msk.bf16.mxu0 %vm1746_vm1, %v1745_v0 }
  0x37   : > { %1507 = vmatprep.subr.bf16.mxu0 %v1745_v0 }
  0x39   : > { %1420 = vmatmul.mubr.msk.bf16.gmra.mrb[8].mxu1 %vm367_vm3, %v366_v54 }
  0x3a   : > { %1425 = vmatprep.mubr.msk.bf16.mxu1 %vm1746_vm1, %v1745_v0 }
  0x3d   : > { %1486 = vmatmul.mubr.msk.bf16.gmra.mrb[4].mxu0 %vm367_vm3, %v794_v56 }
  0x3e   : > { %1489 = vmatprep.mubr.msk.bf16.mxu0 %vm1746_vm1, %v1745_v0 }
  0x41   : > { %1426 = vmatmul.mubr.msk.bf16.vlgmr.msra.gmra.mrb[0].mxu1 %vm367_vm3, %v1882_v39  ;;  %v517_v39 = vsel %vm512_vm4, %v514_v1, %v516_v3 }
  0x42   : > { %1438 = vmatpush3.bf16.msra.mxu1 %v530_v59  ;;  %1429 = vmatprep.mubr.msk.bf16.mxu1 %vm1746_vm1, %v1745_v0 }
  0x43   : > { %1451 = vmatprep.subr.bf16.mxu1 %v1745_v0 }
  0x45   : > { %1490 = vmatmul.mubr.msk.bf16.gmra.mrb[8].mxu0 %vm367_vm3, %v796_v60 }
  0x46   : > { %1495 = vmatprep.mubr.msk.bf16.mxu0 %vm1746_vm1, %v1745_v0 }
  0x49   : > { %1430 = vmatmul.mubr.msk.bf16.gmra.mrb[4].mxu1 %vm367_vm3, %v1886_v43 }
  0x4a   : > { %1433 = vmatprep.mubr.msk.bf16.mxu1 %vm1746_vm1, %v1745_v0 }
  0x4d   : > { %1496 = vmatmul.mubr.msk.bf16.vlgmr.msra.gmra.mrb[0].mxu0 %vm367_vm3, %v1886_v43 }
  0x4e   : > { %1508 = vmatpush3.bf16.msra.mxu0 %v970_v62  ;;  %1499 = vmatprep.mubr.msk.bf16.mxu0 %vm1746_vm1, %v1745_v0 }
  0x4f   : > { %1521 = vmatprep.subr.bf16.mxu0 %v1745_v0 }
  0x51   : > { %1434 = vmatmul.mubr.msk.bf16.gmra.mrb[8].mxu1 %vm367_vm3, %v1888_v44 }
  0x52   : > { %1439 = vmatprep.mubr.msk.bf16.mxu1 %vm1746_vm1, %v1745_v0 }
  0x55   : > { %1500 = vmatmul.mubr.msk.bf16.gmra.mrb[4].mxu0 %vm367_vm3, %v1888_v44  ;;  %v954_v44 = vsel %vm338_vm2, %v361_v42, %v1935_v29 }
  0x56   : > { %1503 = vmatprep.mubr.msk.bf16.mxu0 %vm1746_vm1, %v1745_v0 }
  0x59   : > { %1440 = vmatmul.mubr.msk.bf16.vlgmr.msra.gmra.mrb[0].mxu1 %vm367_vm3, %v515_v2 }
  0x5a   : > { %1452 = vmatpush3.bf16.msra.mxu1 %v1854_v6  ;;  %1443 = vmatprep.mubr.msk.bf16.mxu1 %vm1746_vm1, %v1745_v0  ;;  %v518_v6 = vrot.slane %v1911_v14, 1 }
  0x5b   : > { %1535 = vmatprep.subr.bf16.mxu1 %v1745_v0 }
  0x5c   : > { %v519_v43 = vsel %vm512_vm4, %v516_v3, %v518_v6 }
  0x5d   : > { %1504 = vmatmul.mubr.msk.bf16.gmra.mrb[8].mxu0 %vm367_vm3, %v1913_v15 }
  0x5e   : > { %1509 = vmatprep.mubr.msk.bf16.mxu0 %vm1746_vm1, %v1745_v0 }
  0x61   : > { %1444 = vmatmul.mubr.msk.bf16.gmra.mrb[4].mxu1 %vm367_vm3, %v517_v39 }
  0x62   : > { %1447 = vmatprep.mubr.msk.bf16.mxu1 %vm1746_vm1, %v1745_v0 }
  0x65   : > { %1510 = vmatmul.mubr.msk.bf16.vlgmr.msra.gmra.mrb[0].mxu0 %vm367_vm3, %v1930_v10 }
  0x66   : > { %1522 = vmatpush3.bf16.msra.mxu0 %v1861_v9  ;;  %1513 = vmatprep.mubr.msk.bf16.mxu0 %vm1746_vm1, %v1745_v0 }
  0x69   : > { %1448 = vmatmul.mubr.msk.bf16.gmra.mrb[8].mxu1 %vm367_vm3, %v519_v43 }
  0x6a   : > { %1453 = vmatprep.mubr.msk.bf16.mxu1 %vm1746_vm1, %v1745_v0 }
  0x6d   : > { %1514 = vmatmul.mubr.msk.bf16.gmra.mrb[4].mxu0 %vm367_vm3, %v954_v44 }
  0x6e   : > { %1517 = vmatprep.mubr.msk.bf16.mxu0 %vm1746_vm1, %v1745_v0 }
  0x71   : > { %1454 = vmatmul.mubr.msk.bf16.vlgmr.msra.gmra.mrb[0].mxu1 %vm367_vm3, %v1884_v40 }
  0x72   : > { %1536 = vmatpush3.bf16.msra.mxu1 %v1846_v4  ;;  %1457 = vmatprep.mubr.msk.bf16.mxu1 %vm1746_vm1, %v1745_v0  ;;  %v1042_v4 = vsel %vm512_vm4, %v516_v3, %v1041_v34 }
  0x75   : > { %1518 = vmatmul.mubr.msk.bf16.gmra.mrb[8].mxu0 %vm367_vm3, %v962_v53 }
  0x76   : > { %1523 = vmatprep.mubr.msk.bf16.mxu0 %vm1746_vm1, %v1745_v0 }
  0x79   : > { %1458 = vmatmul.mubr.msk.bf16.gmra.mrb[4].mxu1 %vm367_vm3, %v1890_v45 }
  0x7a   : > { %1461 = vmatprep.mubr.msk.bf16.mxu1 %vm1746_vm1, %v1745_v0 }
  0x7d   : > { %1524 = vmatmul.mubr.msk.bf16.vlgmr.msra.gmra.mrb[0].mxu0 %vm367_vm3, %v517_v39 }
  0x7e   : > { %1527 = vmatprep.mubr.msk.bf16.mxu0 %vm1746_vm1, %v1745_v0 }
  0x81   : > { %1462 = vmatmul.mubr.msk.bf16.gmra.mrb[8].mxu1 %vm367_vm3, %v1924_v20 }
  0x82   : > { %1471 = vmatprep.mubr.msk.bf16.mxu1 %vm1746_vm1, %v1745_v0 }
  0x85   : > { %1528 = vmatmul.mubr.msk.bf16.gmra.mrb[4].mxu0 %vm367_vm3, %v1042_v4 }
  0x86   : > { %1531 = vmatprep.mubr.msk.bf16.mxu0 %vm1746_vm1, %v1745_v0 }
  0x89   : > { %1472 = vmatmul.mubr.msk.bf16.vlgmr.msra.gmra.mrb[4].mxu1 %vm367_vm3, %v1946_v47 }
  0x8a   : > { %1475 = vmatprep.mubr.msk.bf16.mxu1 %vm1746_vm1, %v1745_v0 }
  0x8d   : > { %1532 = vmatmul.mubr.msk.bf16.gmra.mrb[8].mxu0 %vm367_vm3, %v1952_v51 }
  0x91   : > { %1476 = vmatmul.mubr.msk.bf16.gmra.mrb[8].mxu1 %vm367_vm3, %v1955_v52 }
 0x144   : > { %v648_v9 = vpop.f32.mrb[0].mxu1 }
 0x145   : > { %v1455_v40 = vpop.f32.mrb[1].mxu1 }
 0x146   : > { %v651_v45 = vpop.f32.mrb[2].mxu1 }
 0x147   : > { %v1456_v5 = vpop.f32.mrb[3].mxu1 }
 0x150   : > { %v1088_v7 = vpop.f32.mrb[0].mxu0 }
 0x151   : > { %v1537_v8 = vadd.f32 %v1088_v7, %v648_v9  ;;  %v1525_v11 = vpop.f32.mrb[1].mxu0 }
 0x152   : > { %v1091_v12 = vpop.f32.mrb[2].mxu0 }
 0x153   : > { %v1538_v13 = vadd.f32 %v1091_v12, %v651_v45  ;;  %v1526_v14 = vpop.f32.mrb[3].mxu0  ;;  %1121 = vst [vmem:[%s1874_s9] sm:$0xff] (!%p1366_p9), %v1537_v8 }
 0x155   : > { %1122 = vst [vmem:[%s1874_s9 + $0x8] sm:$0xff] (!%p1366_p9), %v1538_v13 }
 0x158   : > { %v1096_v15 = vpop.f32.mrb[4].mxu0 }
 0x159   : > { %v1529_v16 = vpop.f32.mrb[5].mxu0 }
 0x15a   : > { %v1099_v17 = vpop.f32.mrb[6].mxu0 }
 0x15b   : > { %v1530_v0 = vpop.f32.mrb[7].mxu0 }
 0x15c   : > { %v761_v18 = vpop.f32.mrb[4].mxu1 }
 0x15d   : > { %v1539_v19 = vadd.f32 %v1096_v15, %v761_v18  ;;  %v1473_v20 = vpop.f32.mrb[5].mxu1 }
 0x15e   : > { %v764_v21 = vpop.f32.mrb[6].mxu1 }
 0x15f   : > { %v1540_v22 = vadd.f32 %v1099_v17, %v764_v21  ;;  %v1474_v23 = vpop.f32.mrb[7].mxu1  ;;  %1123 = vst [vmem:[%s1874_s9 + $0x10] sm:$0xff] (!%p1366_p9), %v1539_v19 }
 0x160   : > { %v1104_v24 = vpop.f32.mrb[8].mxu0 }
 0x161   : > { %v1533_v25 = vpop.f32.mrb[9].mxu0  ;;  %1120 = sbr.rel (%p1366_p9) target bundleno = 362 (0x16a), region = 44  ;;  %1124 = vst [vmem:[%s1874_s9 + $0x18] sm:$0xff] (!%p1366_p9), %v1540_v22 }
 0x162   : > { %v1107_v10 = vpop.f32.mrb[10].mxu0 }
 0x163   : > { %v1534_v26 = vpop.f32.mrb[11].mxu0 }
 0x164   : > { %v769_v27 = vpop.f32.mrb[8].mxu1 }
 0x165   : > { %v1541_v28 = vadd.f32 %v1104_v24, %v769_v27  ;;  %v1477_v29 = vpop.f32.mrb[9].mxu1 }
 0x166   : > { %v772_v30 = vpop.f32.mrb[10].mxu1 }
 0x167   : > { %v1542_v31 = vadd.f32 %v1107_v10, %v772_v30  ;;  %v1478_v32 = vpop.f32.mrb[11].mxu1  ;;  %1125 = vst [vmem:[%s1874_s9 + $0x20] sm:$0xff] (!%p1366_p9), %v1541_v28 }
 0x169   : > { %1126 = vst [vmem:[%s1874_s9 + $0x28] sm:$0xff] %v1542_v31 }
 0x16a PF: > { %p1367_p10 = scmp.eq.s32.totalorder %s1719_s18, 0 }
 0x16b   : > { %v1131_v33 = vld [vmem:[%s1874_s9] sm:$0xff] (!%p1367_p10)  ;;  %v1132_v34 = vld [vmem:[%s1874_s9 + $0x8] sm:$0xff] (!%p1367_p10)  ;;  %v1133_v35 = vld [vmem:[%s1874_s9 + $0x10] sm:$0xff] (!%p1367_p10) }
 0x16c   : > { %1130 = sbr.rel (%p1367_p10) target bundleno = 372 (0x174), region = 48  ;;  %v1137_v36 = vadd.f32 (!%p1367_p10), %v1537_v8, %v1131_v33  ;;  %v1138_v37 = vadd.f32 (!%p1367_p10), %v1538_v13, %v1132_v34  ;;  %v1139_v38 = vadd.f32 (!%p1367_p10), %v1539_v19, %v1133_v35  ;;  %v1134_v41 = vld [vmem:[%s1874_s9 + $0x18] sm:$0xff] (!%p1367_p10) }
 0x16d   : > { %v1140_v47 = vadd.f32 (!%p1367_p10), %v1540_v22, %v1134_v41 }
 0x16e   : > { %1143 = vst [vmem:[%s1874_s9] sm:$0xff] (!%p1367_p10), %v1137_v36  ;;  %1144 = vst [vmem:[%s1874_s9 + $0x8] sm:$0xff] (!%p1367_p10), %v1138_v37 }
 0x16f   : > { %1145 = vst [vmem:[%s1874_s9 + $0x10] sm:$0xff] (!%p1367_p10), %v1139_v38  ;;  %1146 = vst [vmem:[%s1874_s9 + $0x18] sm:$0xff] (!%p1367_p10), %v1140_v47 }
 0x170   : > { %v1135_v42 = vld [vmem:[%s1874_s9 + $0x20] sm:$0xff] (!%p1367_p10)  ;;  %v1136_v46 = vld [vmem:[%s1874_s9 + $0x28] sm:$0xff] (!%p1367_p10) }
 0x171   : > { %v1141_v48 = vadd.f32 (!%p1367_p10), %v1541_v28, %v1135_v42  ;;  %v1142_v49 = vadd.f32 (!%p1367_p10), %v1542_v31, %v1136_v46 }
 0x173   : > { %1147 = vst [vmem:[%s1874_s9 + $0x20] sm:$0xff] %v1141_v48  ;;  %1148 = vst [vmem:[%s1874_s9 + $0x28] sm:$0xff] %v1142_v49 }
 0x174 PF: > { %p1368_p11 = scmp.ne.s32.totalorder %s1719_s18, 2 }
 0x175   : > { %v1369_v51 = vld [vmem:[%s2127_s4] ss:$0 sm:$0xff] (!%p1368_p11) }
 0x176   : > { %1152 = sbr.rel (%p1368_p11) target bundleno = 382 (0x17e), region = 52  ;;  %v1153_v50 = vld [vmem:[%s1874_s9] sm:$0xff] (!%p1368_p11)  ;;  %v1154_v52 = vld [vmem:[%s1874_s9 + $0x8] sm:$0xff] (!%p1368_p11) }
 0x177   : > { %v1166_v53 = vadd.f32 (!%p1368_p11), %v1369_v51, %v1153_v50  ;;  %v1167_v54 = vadd.f32 (!%p1368_p11), %v1369_v51, %v1154_v52  ;;  %v1155_v55 = vld [vmem:[%s1874_s9 + $0x10] sm:$0xff] (!%p1368_p11)  ;;  %v1156_v56 = vld [vmem:[%s1874_s9 + $0x18] sm:$0xff] (!%p1368_p11) }
 0x178   : > { %v1168_v58 = vadd.f32 (!%p1368_p11), %v1369_v51, %v1155_v55  ;;  %v1169_v59 = vadd.f32 (!%p1368_p11), %v1369_v51, %v1156_v56 }
 0x179   : > { %1172 = vst [vmem:[%s1874_s9] sm:$0xff] (!%p1368_p11), %v1166_v53  ;;  %1173 = vst [vmem:[%s1874_s9 + $0x8] sm:$0xff] (!%p1368_p11), %v1167_v54 }
 0x17a   : > { %v1157_v57 = vld [vmem:[%s1874_s9 + $0x20] sm:$0xff] (!%p1368_p11)  ;;  %v1158_v61 = vld [vmem:[%s1874_s9 + $0x28] sm:$0xff] (!%p1368_p11)  ;;  %1174 = vst [vmem:[%s1874_s9 + $0x10] sm:$0xff] (!%p1368_p11), %v1168_v58  ;;  %1175 = vst [vmem:[%s1874_s9 + $0x18] sm:$0xff] (!%p1368_p11), %v1169_v59 }
 0x17b   : > { %v1170_v60 = vadd.f32 (!%p1368_p11), %v1369_v51, %v1157_v57  ;;  %v1171_v62 = vadd.f32 (!%p1368_p11), %v1369_v51, %v1158_v61 }
 0x17d   : > { %1176 = vst [vmem:[%s1874_s9 + $0x20] sm:$0xff] %v1170_v60  ;;  %1177 = vst [vmem:[%s1874_s9 + $0x28] sm:$0xff] %v1171_v62 }
 0x17e PF: > { %s15_s24 = sadd.s32 1, %s1743_s24   ;;  %s2129_s18 = smov %s1731_s21 }
 0x17f   : > { %p12_p12 = scmp.ge.s32.totalorder %s15_s24, 38   ;;  %s2130_s19 = smov %s1735_s22 }
 0x180   : > { %s2131_s20 = smov %s1739_s23  ;;  %s2132_s21 = smov %s2136_s25 }
 0x181   : > { %s2133_s22 = smov %s2140_s26  ;;  %s2134_s23 = smov %s2144_s27 }
 0x182   :  { %14 = sbr.rel (!%p12_p12) target bundleno = 4 (0x4), region = 91 }

</bundles_post_ra>
